<compile_context>
chip_gen: v7x
topology: tpu7x:2x2x1
jax: 0.10.0
libtpu: 0.0.40
codegen_flags: <defaults>
</compile_context>

<pallas_src>
import functools

import jax
import jax.numpy as jnp
import numpy as np
from jax.experimental import pallas as pl
from jax.experimental.pallas import tpu as pltpu


def lstm_tagger_kernel(ids_ref, emb_ref, wih_ref, whh_ref, b_ref,
                       wtag_ref, btag_ref, out_ref, *, tagset_size):
    """Fused embedding lookup + LSTM recurrence + linear + log_softmax.

    ids_ref : (B,T)   int32 SMEM  token ids (scalar-prefetch, whole batch)
    emb_ref : (V,E)   f32   VMEM  embedding table (VMEM-resident)
    wih_ref : (E,4H)  f32   VMEM  input->gates weight, gate order [i,f,o,2*g]
    whh_ref : (H,4H)  f32   VMEM  hidden->gates weight, gate order [i,f,o,2*g]
    b_ref   : (1,4H)  f32   VMEM  bias_ih + bias_hh,    gate order [i,f,o,2*g]
    wtag_ref: (H,TP)  f32   VMEM  hidden2tag weight, zero-padded to TP lanes
    btag_ref: (1,TP)  f32   VMEM  hidden2tag bias,  zero-padded to TP lanes
    out_ref : (Bt,T,TP) f32 VMEM  log_softmax scores for this sentence block
    """
    blk = pl.program_id(0)
    H = whh_ref.shape[0]
    Bt, T, TP = out_ref.shape

    # --- Embedding lookup: Bt*T dynamic-slice reads of the VMEM table --------
    # Rows are built time-major: row index = t*Bt + b.
    rows = []
    for t in range(T):
        for b in range(Bt):
            tok = ids_ref[blk * Bt + b, t]
            rows.append(emb_ref[pl.ds(tok, 1), :])
    embeds = jnp.concatenate(rows, axis=0)                        # (T*Bt, E)

    # --- Input contribution to all gates for all tokens at once --------------
    # TODO(synk): optionally pre-cast weights to bf16 (single MXU pass) when a
    # strict f32 tolerance is not required; left at the platform default here
    # so the kernel matches the f32 reference bit-for-bit enough for 1e-5-ish.
    xg = jnp.dot(embeds, wih_ref[...],
                 preferred_element_type=jnp.float32) + b_ref[...]  # (T*Bt, 4H)

    # --- LSTM recurrence: fully unrolled, batched over the sentence block ----
    whh = whh_ref[...]
    h = jnp.zeros((Bt, H), jnp.float32)
    c = jnp.zeros((Bt, H), jnp.float32)
    hs = []
    for t in range(T):
        gates = xg[t * Bt:(t + 1) * Bt, :] + jnp.dot(
            h, whh, preferred_element_type=jnp.float32)           # (Bt, 4H)
        sig = jax.nn.sigmoid(gates)          # one EUP pass over [i | f | o | 2g]
        i = sig[:, :H]
        f = sig[:, H:2 * H]
        o = sig[:, 2 * H:3 * H]
        g = 2.0 * sig[:, 3 * H:] - 1.0       # tanh(x) = 2*sigmoid(2x) - 1 (VPU only)
        c = f * c + i * g
        h = o * jnp.tanh(c)                  # second (and last) EUP pass this step
        hs.append(h)
    lstm_out = jnp.concatenate(hs, axis=0)                        # (T*Bt, H)

    # --- hidden2tag + lane-masked log_softmax over padded 128-lane output ----
    tag_space = jnp.dot(lstm_out, wtag_ref[...],
                        preferred_element_type=jnp.float32) + btag_ref[...]
    lane = jax.lax.broadcasted_iota(jnp.int32, tag_space.shape, 1)
    valid = lane < tagset_size
    # Masked max (finite fill) and masked exp-sum: pad lanes never feed the
    # reductions, and exp() on a pad lane stays finite in f32 — do not
    # "simplify" the where away.
    m = jnp.max(jnp.where(valid, tag_space, -1e30), axis=1, keepdims=True)
    s = tag_space - m
    lse = jnp.log(jnp.sum(jnp.where(valid, jnp.exp(s), 0.0),
                          axis=1, keepdims=True))
    scores = s - lse                                              # (T*Bt, TP)

    # Rearrange time-major rows to (Bt, T, TP) and store once (lane-dense).
    out_ref[...] = jnp.transpose(scores.reshape(T, Bt, TP), (1, 0, 2))


# Keep the embedding table VMEM-resident only when it comfortably fits scoped
# VMEM; conservative for v7x (64 MiB physical / 32 MiB scoped default) and
# leaves plenty of room for weights and double-buffered outputs on v5e/v6e.
_VMEM_EMB_TABLE_LIMIT_BYTES = 16 * 1024 * 1024


def prepare_lstm_tagger_params(emb, w_ih, w_hh, b_ih, b_hh, w_tag, b_tag):
    """One-time weight prep — call at parameter-load time, NOT per forward.

    PyTorch layouts in: emb (V,E), w_ih (4H,E), w_hh (4H,H), b_ih/b_hh (4H,),
    w_tag (Tg,H), b_tag (Tg,). Gate order in = [i,f,g,o]; out = [i,f,o,2*g]
    (g pre-scaled by 2 so the kernel uses one sigmoid pass + the tanh identity).
    """
    H = w_hh.shape[1]
    Tg = w_tag.shape[0]
    TP = 128 * pl.cdiv(Tg, 128)                # lane-dense padded tag dimension

    def reorder(w):
        i, f, g, o = jnp.split(w, 4, axis=0)
        return jnp.concatenate([i, f, o, 2.0 * g], axis=0)

    wih_t = reorder(w_ih).T                                      # (E, 4H)
    whh_t = reorder(w_hh).T                                      # (H, 4H)
    bias = reorder(b_ih + b_hh).reshape(1, 4 * H)                # (1, 4H)
    wtag_t = jnp.zeros((H, TP), jnp.float32).at[:, :Tg].set(w_tag.T)
    btag = jnp.zeros((1, TP), jnp.float32).at[0, :Tg].set(b_tag)
    return {
        "emb": jnp.asarray(emb, jnp.float32),
        "wih_t": jnp.asarray(wih_t, jnp.float32),
        "whh_t": jnp.asarray(whh_t, jnp.float32),
        "bias": jnp.asarray(bias, jnp.float32),
        "wtag_t": wtag_t,
        "btag": btag,
        "tagset_size": Tg,
    }


def lstm_tagger_batch(tokens_batch, params, *, block_b=8):
    """tokens_batch: (B, T) int token ids. Returns (B, T, tagset) log-probs."""
    ids = jnp.asarray(tokens_batch, jnp.int32)
    B, T = ids.shape
    emb = params["emb"]
    Tg = params["tagset_size"]
    TP = params["wtag_t"].shape[1]

    if emb.size * emb.dtype.itemsize > _VMEM_EMB_TABLE_LIMIT_BYTES:
        # TODO(synk): add an HBM row-gather fallback (memory_space=pl.ANY +
        # manual make_async_copy with one shared DMA semaphore) for very large
        # vocabularies that do not fit the VMEM-resident path.
        raise NotImplementedError(
            "embedding table too large for the VMEM-resident path")

    block_b = max(1, min(block_b, B))
    n_blocks = pl.cdiv(B, block_b)
    Bp = n_blocks * block_b
    if Bp != B:
        # Pad the batch with token id 0 (valid row); padded outputs are sliced off.
        ids = jnp.concatenate([ids, jnp.zeros((Bp - B, T), jnp.int32)], axis=0)

    out = pl.pallas_call(
        functools.partial(lstm_tagger_kernel, tagset_size=Tg),
        out_shape=jax.ShapeDtypeStruct((Bp, T, TP), jnp.float32),
        grid_spec=pltpu.PrefetchScalarGridSpec(
            num_scalar_prefetch=1,                    # token ids -> SMEM
            grid=(n_blocks,),
            in_specs=[
                # Constant index maps: every weight operand (and the embedding
                # table) is loaded into VMEM once and reused by all blocks.
                pl.BlockSpec(params["emb"].shape, lambda s, ids_ref: (0, 0)),
                pl.BlockSpec(params["wih_t"].shape, lambda s, ids_ref: (0, 0)),
                pl.BlockSpec(params["whh_t"].shape, lambda s, ids_ref: (0, 0)),
                pl.BlockSpec(params["bias"].shape, lambda s, ids_ref: (0, 0)),
                pl.BlockSpec(params["wtag_t"].shape, lambda s, ids_ref: (0, 0)),
                pl.BlockSpec(params["btag"].shape, lambda s, ids_ref: (0, 0)),
            ],
            out_specs=pl.BlockSpec((block_b, T, TP),
                                   lambda s, ids_ref: (s, 0, 0)),
        ),
        compiler_params=pltpu.CompilerParams(
            dimension_semantics=("parallel",)),       # shards across v7x's 2 TCs
    )(ids, params["emb"], params["wih_t"], params["whh_t"], params["bias"],
      params["wtag_t"], params["btag"])
    return out[:B, :, :Tg]


def lstm_tagger(tokens, params):
    """Single-sentence forward (original module semantics): (T,) -> (T, tagset)."""
    return lstm_tagger_batch(tokens[None, :], params, block_b=1)[0]


def lstm_tagger_ref(tokens, emb, w_ih, w_hh, b_ih, b_hh, w_tag, b_tag):
    """Pure-JAX reference with PyTorch semantics (gate order i, f, g, o)."""
    H = w_hh.shape[1]
    embeds = emb[tokens]                                          # (T, E)
    xg = embeds @ w_ih.T + b_ih + b_hh                            # (T, 4H)

    def step(carry, xg_t):
        h, c = carry
        gates = xg_t + w_hh @ h
        i = jax.nn.sigmoid(gates[0:H])
        f = jax.nn.sigmoid(gates[H:2 * H])
        g = jnp.tanh(gates[2 * H:3 * H])
        o = jax.nn.sigmoid(gates[3 * H:4 * H])
        c = f * c + i * g
        h = o * jnp.tanh(c)
        return (h, c), h

    _, hs = jax.lax.scan(step, (jnp.zeros(H), jnp.zeros(H)), xg)
    tag_space = hs @ w_tag.T + b_tag
    return jax.nn.log_softmax(tag_space, axis=1)


if __name__ == "__main__":
    # Small shapes consistent with the module's __init__. BATCH sentences are
    # used to exercise the grid ("parallel" axis) and the batched recurrence;
    # the single-sentence wrapper matches the original forward exactly.
    VOCAB, EMBED, HIDDEN, TAGSET, SEQ, BATCH = 20, 16, 32, 5, 8, 4

    key = jax.random.PRNGKey(0)
    (k_tok, k_emb, k_wih, k_whh, k_bih, k_bhh, k_wtag, k_btag) = jax.random.split(key, 8)

    tokens = jax.random.randint(k_tok, (BATCH, SEQ), 0, VOCAB, dtype=jnp.int32)

    # Deterministic synthetic parameters (PyTorch-like layouts and scales).
    emb = jax.random.normal(k_emb, (VOCAB, EMBED), jnp.float32)
    sc = 1.0 / np.sqrt(HIDDEN)
    w_ih = jax.random.uniform(k_wih, (4 * HIDDEN, EMBED), jnp.float32, -sc, sc)
    w_hh = jax.random.uniform(k_whh, (4 * HIDDEN, HIDDEN), jnp.float32, -sc, sc)
    b_ih = jax.random.uniform(k_bih, (4 * HIDDEN,), jnp.float32, -sc, sc)
    b_hh = jax.random.uniform(k_bhh, (4 * HIDDEN,), jnp.float32, -sc, sc)
    w_tag = jax.random.uniform(k_wtag, (TAGSET, HIDDEN), jnp.float32, -sc, sc)
    b_tag = jax.random.uniform(k_btag, (TAGSET,), jnp.float32, -sc, sc)

    # Weight prep once (parameter-load time), reused for every forward call.
    params = prepare_lstm_tagger_params(emb, w_ih, w_hh, b_ih, b_hh, w_tag, b_tag)

    # Batched path: grid over sentence blocks (2 sentences per block).
    out_batch = jax.block_until_ready(lstm_tagger_batch(tokens, params, block_b=2))
    # Single-sentence path (original module forward semantics).
    out_single = jax.block_until_ready(lstm_tagger(tokens[0], params))

    assert out_batch.shape == (BATCH, SEQ, TAGSET)
    assert out_single.shape == (SEQ, TAGSET)

    ref = jnp.stack([
        lstm_tagger_ref(tokens[i], emb, w_ih, w_hh, b_ih, b_hh, w_tag, b_tag)
        for i in range(BATCH)
    ])
    ref = jax.block_until_ready(ref)

    # atol=2e-5 absorbs the few-ulp EUP difference of the tanh == 2*sigmoid(2x)-1
    # identity accumulated over the unrolled recurrence.
    np.testing.assert_allclose(np.asarray(out_batch), np.asarray(ref),
                               atol=2e-5, rtol=1e-5)
    np.testing.assert_allclose(np.asarray(out_single), np.asarray(ref[0]),
                               atol=2e-5, rtol=1e-5)
    print("KERNEL_OK")
</pallas_src>

<mosaic_0001>
module attributes {stable_mosaic.version = 11 : i64} {
  func.func @lstm_tagger_kernel(%arg0: i32, %arg1: memref<4x8xi32, #tpu.memory_space<smem>>, %arg2: memref<20x16xf32, #tpu.memory_space<vmem>>, %arg3: memref<16x128xf32, #tpu.memory_space<vmem>>, %arg4: memref<32x128xf32, #tpu.memory_space<vmem>>, %arg5: memref<1x128xf32, #tpu.memory_space<vmem>>, %arg6: memref<32x128xf32, #tpu.memory_space<vmem>>, %arg7: memref<1x128xf32, #tpu.memory_space<vmem>>, %arg8: memref<2x8x128xf32, #tpu.memory_space<vmem>>) attributes {dimension_semantics = [#tpu.dimension_semantics<parallel>], iteration_bounds = array<i64: 2>, scalar_prefetch = 1 : i64, scratch_operands = 0 : i64, tpu.core_type = #tpu.core_type<tc>, window_params = [{pipeline_mode = #tpu.pipeline_mode<synchronous>, transform_indices = @transform_0, window_bounds = array<i64: 20, 16>}, {pipeline_mode = #tpu.pipeline_mode<synchronous>, transform_indices = @transform_1, window_bounds = array<i64: 16, 128>}, {pipeline_mode = #tpu.pipeline_mode<synchronous>, transform_indices = @transform_2, window_bounds = array<i64: 32, 128>}, {pipeline_mode = #tpu.pipeline_mode<synchronous>, transform_indices = @transform_3, window_bounds = array<i64: 1, 128>}, {pipeline_mode = #tpu.pipeline_mode<synchronous>, transform_indices = @transform_4, window_bounds = array<i64: 32, 128>}, {pipeline_mode = #tpu.pipeline_mode<synchronous>, transform_indices = @transform_5, window_bounds = array<i64: 1, 128>}, {transform_indices = @transform_6, window_bounds = array<i64: 2, 8, 128>}]} {
    %c2_i32 = arith.constant 2 : i32
    %0 = arith.muli %arg0, %c2_i32 : i32
    %c0_i32 = arith.constant 0 : i32
    %1 = arith.addi %0, %c0_i32 : i32
    %2 = arith.index_cast %1 : i32 to index
    %c0 = arith.constant 0 : index
    %3 = memref.load %arg1[%2, %c0] : memref<4x8xi32, #tpu.memory_space<smem>>
    %4 = arith.index_cast %3 : i32 to index
    %c0_0 = arith.constant 0 : index
    %5 = vector.load %arg2[%4, %c0_0] : memref<20x16xf32, #tpu.memory_space<vmem>>, vector<1x16xf32>
    %c2_i32_1 = arith.constant 2 : i32
    %6 = arith.muli %arg0, %c2_i32_1 : i32
    %c1_i32 = arith.constant 1 : i32
    %7 = arith.addi %6, %c1_i32 : i32
    %8 = arith.index_cast %7 : i32 to index
    %c0_2 = arith.constant 0 : index
    %9 = memref.load %arg1[%8, %c0_2] : memref<4x8xi32, #tpu.memory_space<smem>>
    %10 = arith.index_cast %9 : i32 to index
    %c0_3 = arith.constant 0 : index
    %11 = vector.load %arg2[%10, %c0_3] : memref<20x16xf32, #tpu.memory_space<vmem>>, vector<1x16xf32>
    %c2_i32_4 = arith.constant 2 : i32
    %12 = arith.muli %arg0, %c2_i32_4 : i32
    %c0_i32_5 = arith.constant 0 : i32
    %13 = arith.addi %12, %c0_i32_5 : i32
    %14 = arith.index_cast %13 : i32 to index
    %c1 = arith.constant 1 : index
    %15 = memref.load %arg1[%14, %c1] : memref<4x8xi32, #tpu.memory_space<smem>>
    %16 = arith.index_cast %15 : i32 to index
    %c0_6 = arith.constant 0 : index
    %17 = vector.load %arg2[%16, %c0_6] : memref<20x16xf32, #tpu.memory_space<vmem>>, vector<1x16xf32>
    %c2_i32_7 = arith.constant 2 : i32
    %18 = arith.muli %arg0, %c2_i32_7 : i32
    %c1_i32_8 = arith.constant 1 : i32
    %19 = arith.addi %18, %c1_i32_8 : i32
    %20 = arith.index_cast %19 : i32 to index
    %c1_9 = arith.constant 1 : index
    %21 = memref.load %arg1[%20, %c1_9] : memref<4x8xi32, #tpu.memory_space<smem>>
    %22 = arith.index_cast %21 : i32 to index
    %c0_10 = arith.constant 0 : index
    %23 = vector.load %arg2[%22, %c0_10] : memref<20x16xf32, #tpu.memory_space<vmem>>, vector<1x16xf32>
    %c2_i32_11 = arith.constant 2 : i32
    %24 = arith.muli %arg0, %c2_i32_11 : i32
    %c0_i32_12 = arith.constant 0 : i32
    %25 = arith.addi %24, %c0_i32_12 : i32
    %26 = arith.index_cast %25 : i32 to index
    %c2 = arith.constant 2 : index
    %27 = memref.load %arg1[%26, %c2] : memref<4x8xi32, #tpu.memory_space<smem>>
    %28 = arith.index_cast %27 : i32 to index
    %c0_13 = arith.constant 0 : index
    %29 = vector.load %arg2[%28, %c0_13] : memref<20x16xf32, #tpu.memory_space<vmem>>, vector<1x16xf32>
    %c2_i32_14 = arith.constant 2 : i32
    %30 = arith.muli %arg0, %c2_i32_14 : i32
    %c1_i32_15 = arith.constant 1 : i32
    %31 = arith.addi %30, %c1_i32_15 : i32
    %32 = arith.index_cast %31 : i32 to index
    %c2_16 = arith.constant 2 : index
    %33 = memref.load %arg1[%32, %c2_16] : memref<4x8xi32, #tpu.memory_space<smem>>
    %34 = arith.index_cast %33 : i32 to index
    %c0_17 = arith.constant 0 : index
    %35 = vector.load %arg2[%34, %c0_17] : memref<20x16xf32, #tpu.memory_space<vmem>>, vector<1x16xf32>
    %c2_i32_18 = arith.constant 2 : i32
    %36 = arith.muli %arg0, %c2_i32_18 : i32
    %c0_i32_19 = arith.constant 0 : i32
    %37 = arith.addi %36, %c0_i32_19 : i32
    %38 = arith.index_cast %37 : i32 to index
    %c3 = arith.constant 3 : index
    %39 = memref.load %arg1[%38, %c3] : memref<4x8xi32, #tpu.memory_space<smem>>
    %40 = arith.index_cast %39 : i32 to index
    %c0_20 = arith.constant 0 : index
    %41 = vector.load %arg2[%40, %c0_20] : memref<20x16xf32, #tpu.memory_space<vmem>>, vector<1x16xf32>
    %c2_i32_21 = arith.constant 2 : i32
    %42 = arith.muli %arg0, %c2_i32_21 : i32
    %c1_i32_22 = arith.constant 1 : i32
    %43 = arith.addi %42, %c1_i32_22 : i32
    %44 = arith.index_cast %43 : i32 to index
    %c3_23 = arith.constant 3 : index
    %45 = memref.load %arg1[%44, %c3_23] : memref<4x8xi32, #tpu.memory_space<smem>>
    %46 = arith.index_cast %45 : i32 to index
    %c0_24 = arith.constant 0 : index
    %47 = vector.load %arg2[%46, %c0_24] : memref<20x16xf32, #tpu.memory_space<vmem>>, vector<1x16xf32>
    %c2_i32_25 = arith.constant 2 : i32
    %48 = arith.muli %arg0, %c2_i32_25 : i32
    %c0_i32_26 = arith.constant 0 : i32
    %49 = arith.addi %48, %c0_i32_26 : i32
    %50 = arith.index_cast %49 : i32 to index
    %c4 = arith.constant 4 : index
    %51 = memref.load %arg1[%50, %c4] : memref<4x8xi32, #tpu.memory_space<smem>>
    %52 = arith.index_cast %51 : i32 to index
    %c0_27 = arith.constant 0 : index
    %53 = vector.load %arg2[%52, %c0_27] : memref<20x16xf32, #tpu.memory_space<vmem>>, vector<1x16xf32>
    %c2_i32_28 = arith.constant 2 : i32
    %54 = arith.muli %arg0, %c2_i32_28 : i32
    %c1_i32_29 = arith.constant 1 : i32
    %55 = arith.addi %54, %c1_i32_29 : i32
    %56 = arith.index_cast %55 : i32 to index
    %c4_30 = arith.constant 4 : index
    %57 = memref.load %arg1[%56, %c4_30] : memref<4x8xi32, #tpu.memory_space<smem>>
    %58 = arith.index_cast %57 : i32 to index
    %c0_31 = arith.constant 0 : index
    %59 = vector.load %arg2[%58, %c0_31] : memref<20x16xf32, #tpu.memory_space<vmem>>, vector<1x16xf32>
    %c2_i32_32 = arith.constant 2 : i32
    %60 = arith.muli %arg0, %c2_i32_32 : i32
    %c0_i32_33 = arith.constant 0 : i32
    %61 = arith.addi %60, %c0_i32_33 : i32
    %62 = arith.index_cast %61 : i32 to index
    %c5 = arith.constant 5 : index
    %63 = memref.load %arg1[%62, %c5] : memref<4x8xi32, #tpu.memory_space<smem>>
    %64 = arith.index_cast %63 : i32 to index
    %c0_34 = arith.constant 0 : index
    %65 = vector.load %arg2[%64, %c0_34] : memref<20x16xf32, #tpu.memory_space<vmem>>, vector<1x16xf32>
    %c2_i32_35 = arith.constant 2 : i32
    %66 = arith.muli %arg0, %c2_i32_35 : i32
    %c1_i32_36 = arith.constant 1 : i32
    %67 = arith.addi %66, %c1_i32_36 : i32
    %68 = arith.index_cast %67 : i32 to index
    %c5_37 = arith.constant 5 : index
    %69 = memref.load %arg1[%68, %c5_37] : memref<4x8xi32, #tpu.memory_space<smem>>
    %70 = arith.index_cast %69 : i32 to index
    %c0_38 = arith.constant 0 : index
    %71 = vector.load %arg2[%70, %c0_38] : memref<20x16xf32, #tpu.memory_space<vmem>>, vector<1x16xf32>
    %c2_i32_39 = arith.constant 2 : i32
    %72 = arith.muli %arg0, %c2_i32_39 : i32
    %c0_i32_40 = arith.constant 0 : i32
    %73 = arith.addi %72, %c0_i32_40 : i32
    %74 = arith.index_cast %73 : i32 to index
    %c6 = arith.constant 6 : index
    %75 = memref.load %arg1[%74, %c6] : memref<4x8xi32, #tpu.memory_space<smem>>
    %76 = arith.index_cast %75 : i32 to index
    %c0_41 = arith.constant 0 : index
    %77 = vector.load %arg2[%76, %c0_41] : memref<20x16xf32, #tpu.memory_space<vmem>>, vector<1x16xf32>
    %c2_i32_42 = arith.constant 2 : i32
    %78 = arith.muli %arg0, %c2_i32_42 : i32
    %c1_i32_43 = arith.constant 1 : i32
    %79 = arith.addi %78, %c1_i32_43 : i32
    %80 = arith.index_cast %79 : i32 to index
    %c6_44 = arith.constant 6 : index
    %81 = memref.load %arg1[%80, %c6_44] : memref<4x8xi32, #tpu.memory_space<smem>>
    %82 = arith.index_cast %81 : i32 to index
    %c0_45 = arith.constant 0 : index
    %83 = vector.load %arg2[%82, %c0_45] : memref<20x16xf32, #tpu.memory_space<vmem>>, vector<1x16xf32>
    %c2_i32_46 = arith.constant 2 : i32
    %84 = arith.muli %arg0, %c2_i32_46 : i32
    %c0_i32_47 = arith.constant 0 : i32
    %85 = arith.addi %84, %c0_i32_47 : i32
    %86 = arith.index_cast %85 : i32 to index
    %c7 = arith.constant 7 : index
    %87 = memref.load %arg1[%86, %c7] : memref<4x8xi32, #tpu.memory_space<smem>>
    %88 = arith.index_cast %87 : i32 to index
    %c0_48 = arith.constant 0 : index
    %89 = vector.load %arg2[%88, %c0_48] : memref<20x16xf32, #tpu.memory_space<vmem>>, vector<1x16xf32>
    %c2_i32_49 = arith.constant 2 : i32
    %90 = arith.muli %arg0, %c2_i32_49 : i32
    %c1_i32_50 = arith.constant 1 : i32
    %91 = arith.addi %90, %c1_i32_50 : i32
    %92 = arith.index_cast %91 : i32 to index
    %c7_51 = arith.constant 7 : index
    %93 = memref.load %arg1[%92, %c7_51] : memref<4x8xi32, #tpu.memory_space<smem>>
    %94 = arith.index_cast %93 : i32 to index
    %c0_52 = arith.constant 0 : index
    %95 = vector.load %arg2[%94, %c0_52] : memref<20x16xf32, #tpu.memory_space<vmem>>, vector<1x16xf32>
    %96 = tpu.concatenate %5, %11, %17, %23, %29, %35, %41, %47, %53, %59, %65, %71, %77, %83, %89, %95 in 0 : vector<1x16xf32>, vector<1x16xf32>, vector<1x16xf32>, vector<1x16xf32>, vector<1x16xf32>, vector<1x16xf32>, vector<1x16xf32>, vector<1x16xf32>, vector<1x16xf32>, vector<1x16xf32>, vector<1x16xf32>, vector<1x16xf32>, vector<1x16xf32>, vector<1x16xf32>, vector<1x16xf32>, vector<1x16xf32> -> vector<16x16xf32>
    %c0_53 = arith.constant 0 : index
    %c0_54 = arith.constant 0 : index
    %97 = vector.load %arg3[%c0_53, %c0_54] : memref<16x128xf32, #tpu.memory_space<vmem>>, vector<16x128xf32>
    %cst = arith.constant dense<0.000000e+00> : vector<16x128xf32>
    %98 = tpu.matmul %96, %97, %cst {dimension_numbers = #tpu.dot_dimension_numbers<[1], [0], [0], [1], [0, 0, 1, 1], [], []>} : vector<16x16xf32>, vector<16x128xf32>, vector<16x128xf32> -> vector<16x128xf32>
    %c0_55 = arith.constant 0 : index
    %c0_56 = arith.constant 0 : index
    %99 = vector.load %arg5[%c0_55, %c0_56] : memref<1x128xf32, #tpu.memory_space<vmem>>, vector<1x128xf32>
    %100 = vector.broadcast %99 : vector<1x128xf32> to vector<16x128xf32>
    %101 = arith.addf %98, %100 : vector<16x128xf32>
    %c0_57 = arith.constant 0 : index
    %c0_58 = arith.constant 0 : index
    %102 = vector.load %arg4[%c0_57, %c0_58] : memref<32x128xf32, #tpu.memory_space<vmem>>, vector<32x128xf32>
    %cst_59 = arith.constant 0.000000e+00 : f32
    %103 = vector.broadcast %cst_59 : f32 to vector<2x32xf32>
    %cst_60 = arith.constant 0.000000e+00 : f32
    %104 = vector.broadcast %cst_60 : f32 to vector<2x32xf32>
    %105 = vector.extract_strided_slice %101 {offsets = [0, 0], sizes = [2, 128], strides = [1, 1]} : vector<16x128xf32> to vector<2x128xf32>
    %cst_61 = arith.constant dense<0.000000e+00> : vector<2x128xf32>
    %106 = tpu.matmul %103, %102, %cst_61 {dimension_numbers = #tpu.dot_dimension_numbers<[1], [0], [0], [1], [0, 0, 1, 1], [], []>} : vector<2x32xf32>, vector<32x128xf32>, vector<2x128xf32> -> vector<2x128xf32>
    %107 = arith.addf %105, %106 : vector<2x128xf32>
    %108 = arith.negf %107 : vector<2x128xf32>
    %109 = math.exp %108 : vector<2x128xf32>
    %cst_62 = arith.constant 1.000000e+00 : f32
    %110 = vector.broadcast %cst_62 : f32 to vector<2x128xf32>
    %111 = arith.addf %110, %109 : vector<2x128xf32>
    %112 = arith.divf %110, %111 : vector<2x128xf32>
    %113 = vector.extract_strided_slice %112 {offsets = [0, 0], sizes = [2, 32], strides = [1, 1]} : vector<2x128xf32> to vector<2x32xf32>
    %114 = vector.extract_strided_slice %112 {offsets = [0, 32], sizes = [2, 32], strides = [1, 1]} : vector<2x128xf32> to vector<2x32xf32>
    %115 = vector.extract_strided_slice %112 {offsets = [0, 64], sizes = [2, 32], strides = [1, 1]} : vector<2x128xf32> to vector<2x32xf32>
    %116 = vector.extract_strided_slice %112 {offsets = [0, 96], sizes = [2, 32], strides = [1, 1]} : vector<2x128xf32> to vector<2x32xf32>
    %cst_63 = arith.constant 2.000000e+00 : f32
    %117 = vector.broadcast %cst_63 : f32 to vector<2x32xf32>
    %118 = arith.mulf %117, %116 : vector<2x32xf32>
    %cst_64 = arith.constant 1.000000e+00 : f32
    %119 = vector.broadcast %cst_64 : f32 to vector<2x32xf32>
    %120 = arith.subf %118, %119 : vector<2x32xf32>
    %121 = arith.mulf %114, %104 : vector<2x32xf32>
    %122 = arith.mulf %113, %120 : vector<2x32xf32>
    %123 = arith.addf %121, %122 : vector<2x32xf32>
    %124 = math.tanh %123 : vector<2x32xf32>
    %125 = arith.mulf %115, %124 : vector<2x32xf32>
    %126 = vector.extract_strided_slice %101 {offsets = [2, 0], sizes = [2, 128], strides = [1, 1]} : vector<16x128xf32> to vector<2x128xf32>
    %cst_65 = arith.constant dense<0.000000e+00> : vector<2x128xf32>
    %127 = tpu.matmul %125, %102, %cst_65 {dimension_numbers = #tpu.dot_dimension_numbers<[1], [0], [0], [1], [0, 0, 1, 1], [], []>} : vector<2x32xf32>, vector<32x128xf32>, vector<2x128xf32> -> vector<2x128xf32>
    %128 = arith.addf %126, %127 : vector<2x128xf32>
    %129 = arith.negf %128 : vector<2x128xf32>
    %130 = math.exp %129 : vector<2x128xf32>
    %cst_66 = arith.constant 1.000000e+00 : f32
    %131 = vector.broadcast %cst_66 : f32 to vector<2x128xf32>
    %132 = arith.addf %131, %130 : vector<2x128xf32>
    %133 = arith.divf %131, %132 : vector<2x128xf32>
    %134 = vector.extract_strided_slice %133 {offsets = [0, 0], sizes = [2, 32], strides = [1, 1]} : vector<2x128xf32> to vector<2x32xf32>
    %135 = vector.extract_strided_slice %133 {offsets = [0, 32], sizes = [2, 32], strides = [1, 1]} : vector<2x128xf32> to vector<2x32xf32>
    %136 = vector.extract_strided_slice %133 {offsets = [0, 64], sizes = [2, 32], strides = [1, 1]} : vector<2x128xf32> to vector<2x32xf32>
    %137 = vector.extract_strided_slice %133 {offsets = [0, 96], sizes = [2, 32], strides = [1, 1]} : vector<2x128xf32> to vector<2x32xf32>
    %cst_67 = arith.constant 2.000000e+00 : f32
    %138 = vector.broadcast %cst_67 : f32 to vector<2x32xf32>
    %139 = arith.mulf %138, %137 : vector<2x32xf32>
    %cst_68 = arith.constant 1.000000e+00 : f32
    %140 = vector.broadcast %cst_68 : f32 to vector<2x32xf32>
    %141 = arith.subf %139, %140 : vector<2x32xf32>
    %142 = arith.mulf %135, %123 : vector<2x32xf32>
    %143 = arith.mulf %134, %141 : vector<2x32xf32>
    %144 = arith.addf %142, %143 : vector<2x32xf32>
    %145 = math.tanh %144 : vector<2x32xf32>
    %146 = arith.mulf %136, %145 : vector<2x32xf32>
    %147 = vector.extract_strided_slice %101 {offsets = [4, 0], sizes = [2, 128], strides = [1, 1]} : vector<16x128xf32> to vector<2x128xf32>
    %cst_69 = arith.constant dense<0.000000e+00> : vector<2x128xf32>
    %148 = tpu.matmul %146, %102, %cst_69 {dimension_numbers = #tpu.dot_dimension_numbers<[1], [0], [0], [1], [0, 0, 1, 1], [], []>} : vector<2x32xf32>, vector<32x128xf32>, vector<2x128xf32> -> vector<2x128xf32>
    %149 = arith.addf %147, %148 : vector<2x128xf32>
    %150 = arith.negf %149 : vector<2x128xf32>
    %151 = math.exp %150 : vector<2x128xf32>
    %cst_70 = arith.constant 1.000000e+00 : f32
    %152 = vector.broadcast %cst_70 : f32 to vector<2x128xf32>
    %153 = arith.addf %152, %151 : vector<2x128xf32>
    %154 = arith.divf %152, %153 : vector<2x128xf32>
    %155 = vector.extract_strided_slice %154 {offsets = [0, 0], sizes = [2, 32], strides = [1, 1]} : vector<2x128xf32> to vector<2x32xf32>
    %156 = vector.extract_strided_slice %154 {offsets = [0, 32], sizes = [2, 32], strides = [1, 1]} : vector<2x128xf32> to vector<2x32xf32>
    %157 = vector.extract_strided_slice %154 {offsets = [0, 64], sizes = [2, 32], strides = [1, 1]} : vector<2x128xf32> to vector<2x32xf32>
    %158 = vector.extract_strided_slice %154 {offsets = [0, 96], sizes = [2, 32], strides = [1, 1]} : vector<2x128xf32> to vector<2x32xf32>
    %cst_71 = arith.constant 2.000000e+00 : f32
    %159 = vector.broadcast %cst_71 : f32 to vector<2x32xf32>
    %160 = arith.mulf %159, %158 : vector<2x32xf32>
    %cst_72 = arith.constant 1.000000e+00 : f32
    %161 = vector.broadcast %cst_72 : f32 to vector<2x32xf32>
    %162 = arith.subf %160, %161 : vector<2x32xf32>
    %163 = arith.mulf %156, %144 : vector<2x32xf32>
    %164 = arith.mulf %155, %162 : vector<2x32xf32>
    %165 = arith.addf %163, %164 : vector<2x32xf32>
    %166 = math.tanh %165 : vector<2x32xf32>
    %167 = arith.mulf %157, %166 : vector<2x32xf32>
    %168 = vector.extract_strided_slice %101 {offsets = [6, 0], sizes = [2, 128], strides = [1, 1]} : vector<16x128xf32> to vector<2x128xf32>
    %cst_73 = arith.constant dense<0.000000e+00> : vector<2x128xf32>
    %169 = tpu.matmul %167, %102, %cst_73 {dimension_numbers = #tpu.dot_dimension_numbers<[1], [0], [0], [1], [0, 0, 1, 1], [], []>} : vector<2x32xf32>, vector<32x128xf32>, vector<2x128xf32> -> vector<2x128xf32>
    %170 = arith.addf %168, %169 : vector<2x128xf32>
    %171 = arith.negf %170 : vector<2x128xf32>
    %172 = math.exp %171 : vector<2x128xf32>
    %cst_74 = arith.constant 1.000000e+00 : f32
    %173 = vector.broadcast %cst_74 : f32 to vector<2x128xf32>
    %174 = arith.addf %173, %172 : vector<2x128xf32>
    %175 = arith.divf %173, %174 : vector<2x128xf32>
    %176 = vector.extract_strided_slice %175 {offsets = [0, 0], sizes = [2, 32], strides = [1, 1]} : vector<2x128xf32> to vector<2x32xf32>
    %177 = vector.extract_strided_slice %175 {offsets = [0, 32], sizes = [2, 32], strides = [1, 1]} : vector<2x128xf32> to vector<2x32xf32>
    %178 = vector.extract_strided_slice %175 {offsets = [0, 64], sizes = [2, 32], strides = [1, 1]} : vector<2x128xf32> to vector<2x32xf32>
    %179 = vector.extract_strided_slice %175 {offsets = [0, 96], sizes = [2, 32], strides = [1, 1]} : vector<2x128xf32> to vector<2x32xf32>
    %cst_75 = arith.constant 2.000000e+00 : f32
    %180 = vector.broadcast %cst_75 : f32 to vector<2x32xf32>
    %181 = arith.mulf %180, %179 : vector<2x32xf32>
    %cst_76 = arith.constant 1.000000e+00 : f32
    %182 = vector.broadcast %cst_76 : f32 to vector<2x32xf32>
    %183 = arith.subf %181, %182 : vector<2x32xf32>
    %184 = arith.mulf %177, %165 : vector<2x32xf32>
    %185 = arith.mulf %176, %183 : vector<2x32xf32>
    %186 = arith.addf %184, %185 : vector<2x32xf32>
    %187 = math.tanh %186 : vector<2x32xf32>
    %188 = arith.mulf %178, %187 : vector<2x32xf32>
    %189 = vector.extract_strided_slice %101 {offsets = [8, 0], sizes = [2, 128], strides = [1, 1]} : vector<16x128xf32> to vector<2x128xf32>
    %cst_77 = arith.constant dense<0.000000e+00> : vector<2x128xf32>
    %190 = tpu.matmul %188, %102, %cst_77 {dimension_numbers = #tpu.dot_dimension_numbers<[1], [0], [0], [1], [0, 0, 1, 1], [], []>} : vector<2x32xf32>, vector<32x128xf32>, vector<2x128xf32> -> vector<2x128xf32>
    %191 = arith.addf %189, %190 : vector<2x128xf32>
    %192 = arith.negf %191 : vector<2x128xf32>
    %193 = math.exp %192 : vector<2x128xf32>
    %cst_78 = arith.constant 1.000000e+00 : f32
    %194 = vector.broadcast %cst_78 : f32 to vector<2x128xf32>
    %195 = arith.addf %194, %193 : vector<2x128xf32>
    %196 = arith.divf %194, %195 : vector<2x128xf32>
    %197 = vector.extract_strided_slice %196 {offsets = [0, 0], sizes = [2, 32], strides = [1, 1]} : vector<2x128xf32> to vector<2x32xf32>
    %198 = vector.extract_strided_slice %196 {offsets = [0, 32], sizes = [2, 32], strides = [1, 1]} : vector<2x128xf32> to vector<2x32xf32>
    %199 = vector.extract_strided_slice %196 {offsets = [0, 64], sizes = [2, 32], strides = [1, 1]} : vector<2x128xf32> to vector<2x32xf32>
    %200 = vector.extract_strided_slice %196 {offsets = [0, 96], sizes = [2, 32], strides = [1, 1]} : vector<2x128xf32> to vector<2x32xf32>
    %cst_79 = arith.constant 2.000000e+00 : f32
    %201 = vector.broadcast %cst_79 : f32 to vector<2x32xf32>
    %202 = arith.mulf %201, %200 : vector<2x32xf32>
    %cst_80 = arith.constant 1.000000e+00 : f32
    %203 = vector.broadcast %cst_80 : f32 to vector<2x32xf32>
    %204 = arith.subf %202, %203 : vector<2x32xf32>
    %205 = arith.mulf %198, %186 : vector<2x32xf32>
    %206 = arith.mulf %197, %204 : vector<2x32xf32>
    %207 = arith.addf %205, %206 : vector<2x32xf32>
    %208 = math.tanh %207 : vector<2x32xf32>
    %209 = arith.mulf %199, %208 : vector<2x32xf32>
    %210 = vector.extract_strided_slice %101 {offsets = [10, 0], sizes = [2, 128], strides = [1, 1]} : vector<16x128xf32> to vector<2x128xf32>
    %cst_81 = arith.constant dense<0.000000e+00> : vector<2x128xf32>
    %211 = tpu.matmul %209, %102, %cst_81 {dimension_numbers = #tpu.dot_dimension_numbers<[1], [0], [0], [1], [0, 0, 1, 1], [], []>} : vector<2x32xf32>, vector<32x128xf32>, vector<2x128xf32> -> vector<2x128xf32>
    %212 = arith.addf %210, %211 : vector<2x128xf32>
    %213 = arith.negf %212 : vector<2x128xf32>
    %214 = math.exp %213 : vector<2x128xf32>
    %cst_82 = arith.constant 1.000000e+00 : f32
    %215 = vector.broadcast %cst_82 : f32 to vector<2x128xf32>
    %216 = arith.addf %215, %214 : vector<2x128xf32>
    %217 = arith.divf %215, %216 : vector<2x128xf32>
    %218 = vector.extract_strided_slice %217 {offsets = [0, 0], sizes = [2, 32], strides = [1, 1]} : vector<2x128xf32> to vector<2x32xf32>
    %219 = vector.extract_strided_slice %217 {offsets = [0, 32], sizes = [2, 32], strides = [1, 1]} : vector<2x128xf32> to vector<2x32xf32>
    %220 = vector.extract_strided_slice %217 {offsets = [0, 64], sizes = [2, 32], strides = [1, 1]} : vector<2x128xf32> to vector<2x32xf32>
    %221 = vector.extract_strided_slice %217 {offsets = [0, 96], sizes = [2, 32], strides = [1, 1]} : vector<2x128xf32> to vector<2x32xf32>
    %cst_83 = arith.constant 2.000000e+00 : f32
    %222 = vector.broadcast %cst_83 : f32 to vector<2x32xf32>
    %223 = arith.mulf %222, %221 : vector<2x32xf32>
    %cst_84 = arith.constant 1.000000e+00 : f32
    %224 = vector.broadcast %cst_84 : f32 to vector<2x32xf32>
    %225 = arith.subf %223, %224 : vector<2x32xf32>
    %226 = arith.mulf %219, %207 : vector<2x32xf32>
    %227 = arith.mulf %218, %225 : vector<2x32xf32>
    %228 = arith.addf %226, %227 : vector<2x32xf32>
    %229 = math.tanh %228 : vector<2x32xf32>
    %230 = arith.mulf %220, %229 : vector<2x32xf32>
    %231 = vector.extract_strided_slice %101 {offsets = [12, 0], sizes = [2, 128], strides = [1, 1]} : vector<16x128xf32> to vector<2x128xf32>
    %cst_85 = arith.constant dense<0.000000e+00> : vector<2x128xf32>
    %232 = tpu.matmul %230, %102, %cst_85 {dimension_numbers = #tpu.dot_dimension_numbers<[1], [0], [0], [1], [0, 0, 1, 1], [], []>} : vector<2x32xf32>, vector<32x128xf32>, vector<2x128xf32> -> vector<2x128xf32>
    %233 = arith.addf %231, %232 : vector<2x128xf32>
    %234 = arith.negf %233 : vector<2x128xf32>
    %235 = math.exp %234 : vector<2x128xf32>
    %cst_86 = arith.constant 1.000000e+00 : f32
    %236 = vector.broadcast %cst_86 : f32 to vector<2x128xf32>
    %237 = arith.addf %236, %235 : vector<2x128xf32>
    %238 = arith.divf %236, %237 : vector<2x128xf32>
    %239 = vector.extract_strided_slice %238 {offsets = [0, 0], sizes = [2, 32], strides = [1, 1]} : vector<2x128xf32> to vector<2x32xf32>
    %240 = vector.extract_strided_slice %238 {offsets = [0, 32], sizes = [2, 32], strides = [1, 1]} : vector<2x128xf32> to vector<2x32xf32>
    %241 = vector.extract_strided_slice %238 {offsets = [0, 64], sizes = [2, 32], strides = [1, 1]} : vector<2x128xf32> to vector<2x32xf32>
    %242 = vector.extract_strided_slice %238 {offsets = [0, 96], sizes = [2, 32], strides = [1, 1]} : vector<2x128xf32> to vector<2x32xf32>
    %cst_87 = arith.constant 2.000000e+00 : f32
    %243 = vector.broadcast %cst_87 : f32 to vector<2x32xf32>
    %244 = arith.mulf %243, %242 : vector<2x32xf32>
    %cst_88 = arith.constant 1.000000e+00 : f32
    %245 = vector.broadcast %cst_88 : f32 to vector<2x32xf32>
    %246 = arith.subf %244, %245 : vector<2x32xf32>
    %247 = arith.mulf %240, %228 : vector<2x32xf32>
    %248 = arith.mulf %239, %246 : vector<2x32xf32>
    %249 = arith.addf %247, %248 : vector<2x32xf32>
    %250 = math.tanh %249 : vector<2x32xf32>
    %251 = arith.mulf %241, %250 : vector<2x32xf32>
    %252 = vector.extract_strided_slice %101 {offsets = [14, 0], sizes = [2, 128], strides = [1, 1]} : vector<16x128xf32> to vector<2x128xf32>
    %cst_89 = arith.constant dense<0.000000e+00> : vector<2x128xf32>
    %253 = tpu.matmul %251, %102, %cst_89 {dimension_numbers = #tpu.dot_dimension_numbers<[1], [0], [0], [1], [0, 0, 1, 1], [], []>} : vector<2x32xf32>, vector<32x128xf32>, vector<2x128xf32> -> vector<2x128xf32>
    %254 = arith.addf %252, %253 : vector<2x128xf32>
    %255 = arith.negf %254 : vector<2x128xf32>
    %256 = math.exp %255 : vector<2x128xf32>
    %cst_90 = arith.constant 1.000000e+00 : f32
    %257 = vector.broadcast %cst_90 : f32 to vector<2x128xf32>
    %258 = arith.addf %257, %256 : vector<2x128xf32>
    %259 = arith.divf %257, %258 : vector<2x128xf32>
    %260 = vector.extract_strided_slice %259 {offsets = [0, 0], sizes = [2, 32], strides = [1, 1]} : vector<2x128xf32> to vector<2x32xf32>
    %261 = vector.extract_strided_slice %259 {offsets = [0, 32], sizes = [2, 32], strides = [1, 1]} : vector<2x128xf32> to vector<2x32xf32>
    %262 = vector.extract_strided_slice %259 {offsets = [0, 64], sizes = [2, 32], strides = [1, 1]} : vector<2x128xf32> to vector<2x32xf32>
    %263 = vector.extract_strided_slice %259 {offsets = [0, 96], sizes = [2, 32], strides = [1, 1]} : vector<2x128xf32> to vector<2x32xf32>
    %cst_91 = arith.constant 2.000000e+00 : f32
    %264 = vector.broadcast %cst_91 : f32 to vector<2x32xf32>
    %265 = arith.mulf %264, %263 : vector<2x32xf32>
    %cst_92 = arith.constant 1.000000e+00 : f32
    %266 = vector.broadcast %cst_92 : f32 to vector<2x32xf32>
    %267 = arith.subf %265, %266 : vector<2x32xf32>
    %268 = arith.mulf %261, %249 : vector<2x32xf32>
    %269 = arith.mulf %260, %267 : vector<2x32xf32>
    %270 = arith.addf %268, %269 : vector<2x32xf32>
    %271 = math.tanh %270 : vector<2x32xf32>
    %272 = arith.mulf %262, %271 : vector<2x32xf32>
    %273 = tpu.concatenate %125, %146, %167, %188, %209, %230, %251, %272 in 0 : vector<2x32xf32>, vector<2x32xf32>, vector<2x32xf32>, vector<2x32xf32>, vector<2x32xf32>, vector<2x32xf32>, vector<2x32xf32>, vector<2x32xf32> -> vector<16x32xf32>
    %c0_93 = arith.constant 0 : index
    %c0_94 = arith.constant 0 : index
    %274 = vector.load %arg6[%c0_93, %c0_94] : memref<32x128xf32, #tpu.memory_space<vmem>>, vector<32x128xf32>
    %cst_95 = arith.constant dense<0.000000e+00> : vector<16x128xf32>
    %275 = tpu.matmul %273, %274, %cst_95 {dimension_numbers = #tpu.dot_dimension_numbers<[1], [0], [0], [1], [0, 0, 1, 1], [], []>} : vector<16x32xf32>, vector<32x128xf32>, vector<16x128xf32> -> vector<16x128xf32>
    %c0_96 = arith.constant 0 : index
    %c0_97 = arith.constant 0 : index
    %276 = vector.load %arg7[%c0_96, %c0_97] : memref<1x128xf32, #tpu.memory_space<vmem>>, vector<1x128xf32>
    %277 = vector.broadcast %276 : vector<1x128xf32> to vector<16x128xf32>
    %278 = arith.addf %275, %277 : vector<16x128xf32>
    %279 = tpu.iota {dimensions = array<i32: 1>} : vector<16x128xi32>
    %c5_i32 = arith.constant 5 : i32
    %280 = vector.broadcast %c5_i32 : i32 to vector<16x128xi32>
    %281 = arith.cmpi slt, %279, %280 : vector<16x128xi32>
    %cst_98 = arith.constant -1.000000e+30 : f32
    %282 = vector.broadcast %cst_98 : f32 to vector<16x128xf32>
    %283 = arith.select %281, %278, %282 : vector<16x128xi1>, vector<16x128xf32>
    %cst_99 = arith.constant dense<0xFF800000> : vector<16xf32>
    %284 = vector.multi_reduction <maximumf>, %283, %cst_99 [1] : vector<16x128xf32> to vector<16xf32>
    %285 = vector.shape_cast %284 : vector<16xf32> to vector<16x1xf32>
    %286 = vector.broadcast %285 : vector<16x1xf32> to vector<16x128xf32>
    %287 = arith.subf %278, %286 : vector<16x128xf32>
    %288 = math.exp %287 : vector<16x128xf32>
    %cst_100 = arith.constant 0.000000e+00 : f32
    %289 = vector.broadcast %cst_100 : f32 to vector<16x128xf32>
    %290 = arith.select %281, %288, %289 : vector<16x128xi1>, vector<16x128xf32>
    %cst_101 = arith.constant dense<0.000000e+00> : vector<16xf32>
    %291 = vector.multi_reduction <add>, %290, %cst_101 [1] : vector<16x128xf32> to vector<16xf32>
    %292 = vector.shape_cast %291 : vector<16xf32> to vector<16x1xf32>
    %293 = math.log %292 : vector<16x1xf32>
    %294 = vector.broadcast %293 : vector<16x1xf32> to vector<16x128xf32>
    %295 = arith.subf %287, %294 : vector<16x128xf32>
    %296 = vector.shape_cast %295 : vector<16x128xf32> to vector<8x2x128xf32>
    %297 = tpu.transpose %296, [1, 0, 2] : vector<8x2x128xf32> -> vector<2x8x128xf32>
    %c0_102 = arith.constant 0 : index
    %c0_103 = arith.constant 0 : index
    %c0_104 = arith.constant 0 : index
    %298 = vector.load %arg8[%c0_102, %c0_103, %c0_104] : memref<2x8x128xf32, #tpu.memory_space<vmem>>, vector<2x8x128xf32>
    tpu.vector_store %arg8[%c0_102, %c0_103, %c0_104], %297 {strides = array<i32>} : memref<2x8x128xf32, #tpu.memory_space<vmem>>, vector<2x8x128xf32>,
    return
  }
  func.func @transform_0(%arg0: i32, %arg1: memref<4x8xi32, #tpu.memory_space<smem>>) -> (i32, i32) {
    %c0_i32 = arith.constant 0 : i32
    %c0_i32_0 = arith.constant 0 : i32
    %c0_i32_1 = arith.constant 0 : i32
    return %c0_i32, %c0_i32_0 : i32, i32
  }
  func.func @transform_1(%arg0: i32, %arg1: memref<4x8xi32, #tpu.memory_space<smem>>) -> (i32, i32) {
    %c0_i32 = arith.constant 0 : i32
    %c0_i32_0 = arith.constant 0 : i32
    %c0_i32_1 = arith.constant 0 : i32
    return %c0_i32, %c0_i32_0 : i32, i32
  }
  func.func @transform_2(%arg0: i32, %arg1: memref<4x8xi32, #tpu.memory_space<smem>>) -> (i32, i32) {
    %c0_i32 = arith.constant 0 : i32
    %c0_i32_0 = arith.constant 0 : i32
    %c0_i32_1 = arith.constant 0 : i32
    return %c0_i32, %c0_i32_0 : i32, i32
  }
  func.func @transform_3(%arg0: i32, %arg1: memref<4x8xi32, #tpu.memory_space<smem>>) -> (i32, i32) {
    %c0_i32 = arith.constant 0 : i32
    %c0_i32_0 = arith.constant 0 : i32
    %c0_i32_1 = arith.constant 0 : i32
    return %c0_i32, %c0_i32_0 : i32, i32
  }
  func.func @transform_4(%arg0: i32, %arg1: memref<4x8xi32, #tpu.memory_space<smem>>) -> (i32, i32) {
    %c0_i32 = arith.constant 0 : i32
    %c0_i32_0 = arith.constant 0 : i32
    %c0_i32_1 = arith.constant 0 : i32
    return %c0_i32, %c0_i32_0 : i32, i32
  }
  func.func @transform_5(%arg0: i32, %arg1: memref<4x8xi32, #tpu.memory_space<smem>>) -> (i32, i32) {
    %c0_i32 = arith.constant 0 : i32
    %c0_i32_0 = arith.constant 0 : i32
    %c0_i32_1 = arith.constant 0 : i32
    return %c0_i32, %c0_i32_0 : i32, i32
  }
  func.func @transform_6(%arg0: i32, %arg1: memref<4x8xi32, #tpu.memory_space<smem>>) -> (i32, i32, i32) {
    %c0_i32 = arith.constant 0 : i32
    %c0_i32_0 = arith.constant 0 : i32
    %c0_i32_1 = arith.constant 0 : i32
    return %arg0, %c0_i32, %c0_i32_0 : i32, i32, i32
  }
}

</mosaic_0001>

<bundles_post_ra>
// kernel: tpu_custom_call.1
= control target key start
LH: loop header
LB: loop body
LE: loop exit
PB: predicated region body
PF: predicated region fallthrough
CT: control target
= control target key end

     0   :  { %s2633_s0 = inlined_call_operand.hbm [shape: s32[4,8], index: 0, kind: input, shape index: {}]   ;;  %s2634_s1 = inlined_call_operand.vmem [shape: f32[20,16], index: 1, kind: input, shape index: {}]   ;;  %s2635_s2 = inlined_call_operand.vmem [shape: f32[16,128], index: 2, kind: input, shape index: {}]   ;;  %s2636_s3 = inlined_call_operand.vmem [shape: f32[32,128], index: 3, kind: input, shape index: {}]   ;;  %s2637_s4 = inlined_call_operand.vmem [shape: f32[1,128], index: 4, kind: input, shape index: {}]   ;;  %s2638_s5 = inlined_call_operand.hbm [shape: f32[32,128], index: 5, kind: input, shape index: {}]   ;;  %s2639_s6 = inlined_call_operand.vmem [shape: f32[1,128], index: 6, kind: input, shape index: {}]   ;;  %s2640_s7 = inlined_call_operand.hbm [shape: f32[4,8,128], index: 7, kind: output, shape index: {}]  }
   0x1   :  { %2648 = sst [smem:[#allocation15_spill]] %s2638_s5  ;;  %s2057_s26 = scalar_lea.hbm %s2633_s0, 64 }
   0x2   :  { %p2058_p0 = scmp.ne.s32.totalorder %s2633_s0, %s2057_s26  ;;  %p2061_p1 = scmp.lt.u32.totalorder %s2057_s26, %s2633_s0 }
   0x4   :  { %p2063_p2 = pnand %p2061_p1, %p2058_p0 }
   0x6   :  { %2066 = shalt.err (!%p2063_p2)  }
   0x7   :  { %s2165_s8 = smov [#allocation3]  }
   0x8   :  { %13 = dma.hbm_to_smem %s2633_s0, 64, %s2165_s8, [#allocation2] }
   0x9   :  { %2139 = dma.done.wait [#allocation2], 64 }
   0xa   :  { %2140 = vsyncadd [#allocation2], 4294967232 }
   0xb   :  { %15 = sfence }
   0xc   :  { %16 = vsyncpa [#allocation5], 0 }
   0xd   :  { %17 = vsyncpa [#allocation6], 0 }
   0xe   :  { %19 = vsyncpa [#allocation6 + $0x1], 0  ;;  %s2231_s11 = smov 0   ;;  %s2233_s12 = smov 0  }
   0xf   :  { %s2235_s13 = smov 0   ;;  %s2237_s14 = smov 0  }
  0x10 LB: > { %2649 = sst [smem:[#allocation11_spill]] %s2159_s13  ;;  %s2252_s0 = sadd.s32 4294967295, %s2163_s14   ;;  %s2163_s14 = sphi %s2237_s14, %s2664_s14   ;;  %s2159_s13 = sphi %s2235_s13, %s2666_s13   ;;  %s2155_s12 = sphi %s2233_s12, %s2668_s12   ;;  %s2151_s11 = sphi %s2231_s11, %s2667_s11  }
  0x11   : > { %s1673_s15 = sadd.s32 4294967294, %s2163_s14   ;;  %s2256_s16 = sadd.s32 1, %s2163_s14  }
  0x12   : > { %2650 = sst [smem:[#allocation12_spill]] %s2256_s16  ;;  %s158_s17 = sadd.s32 1, %s2159_s13 }
  0x13   : > { %s155_s18 = ssub.s32 %s2163_s14, %s2256_s16  ;;  %p168_p3 = scmp.ne.s32.totalorder %s2159_s13, %s2155_s12 }
  0x14   : > { %p156_p4 = scmp.eq.s32.totalorder %s155_s18, 0  ;;  %p169_p5 = scmp.eq.s32.totalorder %s2252_s0, 1 }
  0x15   : > { %p174_p6 = scmp.ne.s32.totalorder %s2155_s12, %s2151_s11  ;;  %p175_p7 = scmp.eq.s32.totalorder %s1673_s15, 1 }
  0x16   : > { %s2267_s19 = scalar_select %p156_p4, %s2159_s13, %s158_s17  }
  0x17   : > { %p2269_p8 = por %p169_p5, %p168_p3  ;;  %p2273_p9 = por %p175_p7, %p174_p6 }
  0x18   : > { %2651 = sst [smem:[#allocation13_spill]] %s2267_s19  ;;  %p1674_p10 = scmp.ge.s32.totalorder %s2163_s14, 1 }
  0x19   : > { %s2652_s20 = scalar_select %p2269_p8, 1, 0 }
  0x1a   : > { %s2653_s21 = scalar_select %p2273_p9, 1, 0 }
  0x1b   : > { %p182_p11 = scmp.lt.s32.totalorder %s2163_s14, 3  ;;  %p2641_p12 = scmp.eq.s32.totalorder %s2252_s0, 0 }
  0x1c   : > { %2654 = sst [smem:[#allocation14_spill]] %s2653_s21  ;;  %s2166_s23 = smov [#allocation4]  }
  0x1d   : > { %p2280_p13 = pnand %p1674_p10, %p182_p11  ;;  %s206_s24 = sshll.u32 %s2166_s23, 4  ;;  %s207_s24 = int_to_ptr.vmem [resolvable:$true] %s206_s24 }
  0x1e   : > { %s2657_s5 = sld [smem:[#allocation15_spill]] }
  0x1f   : > { %s2655_s22 = scalar_select %p2280_p13, 1, 0 }
  0x20   : > { %p1945_p0 = pneg %p2280_p13 }
  0x22   : > { %p2288_p1 = pnand %p2641_p12, %p1945_p0 }
  0x24   : > { %s2067_s28 = scalar_lea.hbm %s2657_s5, 512  ;;  %p2069_p3 = pneg %p2288_p1 }
  0x25   : > { %p2068_p2 = scmp.ne.s32.totalorder %s2657_s5, %s2067_s28  ;;  %p2074_p6 = scmp.lt.u32.totalorder %s2067_s28, %s2657_s5 }
  0x27   : > { %p2070_p4 = pnand %p2069_p3, %p2068_p2 }
  0x29   : > { %p2071_p5 = pneg %p2070_p4 }
  0x2b   : > { %p2076_p7 = pnand %p2074_p6, %p2071_p5 }
  0x2d   : > { %2079 = shalt.err (!%p2076_p7)
}
  0x2e   : > { %s2080_s10 = scalar_lea.vmem %s207_s24, 512  ;;  %p2088_p12 = scmp.lt.s32.totalorder %s207_s24, %s207_s24 }
  0x2f   : > { %p2081_p10 = scmp.ne.s32.totalorder %s207_s24, %s2080_s10  ;;  %p2089_p9 = scmp.lt.s32.totalorder %s2080_s10, %s2080_s10 }
  0x31   : > { %p2083_p11 = pnand %p2081_p10, %p2069_p3  ;;  %p2090_p8 = por %p2089_p9, %p2088_p12 }
  0x33   : > { %p2084_p0 = pneg %p2083_p11 }
  0x35   : > { %p2091_p13 = pnand %p2090_p8, %p2084_p0 }
  0x37   : > { %2094 = shalt.err (!%p2091_p13)
}
  0x38   : > { %s2167_s15 = smov 128   ;;  %s2168_s17 = smov 8  }
  0x39   : > { %1948 = dma.hbm_to_vmem [thread:$0]  (!%p2288_p1), %s2657_s5, 512, %s207_s24, [#allocation5], %s2167_s15, %s2167_s15, %s2168_s17  }
  0x3a   : > { %p2658_p2 = scmp.ne.s32.totalorder %s2655_s22, 0 }
  0x3b   : > { %p2659_p4 = scmp.eq.s32.totalorder (!%p2658_p2), %s2252_s0, 0 }
  0x3c   : > { %225 = sbr.rel (%p2658_p2) target bundleno = 6456 (0x1938), region = 44 }
  0x43   : > { %2142 = dma.done.wait (%p2659_p4), [#allocation5], 512   ;;  %p2660_p3 = pmov %p2659_p4 }
  0x44   : > { %s2315_s26 = sshll.u32 %s2252_s0, 8  ;;  %v2169_v0 = vmov 0.0|0.0   ;;  %vm2170_vm0 = vmmov 0   ;;  %v2171_v1 = vmov 0.0   ;;  %v471_v2 = vld [vmem:[%s2636_s3] sm:$0xff]  ;;  %v472_v3 = vld [vmem:[%s2636_s3 + $0x8] sm:$0xff] }
  0x45   : > { %2144 = vsyncadd (%p2660_p3), [#allocation5], 4294966784  ;;  %1883 = vmatprep.subr.bf16.mxu1 %v2169_v0  ;;  %s253_s24 = sld [smem:[#allocation3 + %s2315_s26]]  ;;  %s2320_s22 = sadd.s32 128, %s2315_s26  ;;  %1788 = vmatprep.mubr.msk.f32.mxu1 %vm2170_vm0, %v2171_v1  ;;  %v380_v4 = vld [vmem:[%s2635_s2] sm:$0xff]  ;;  %v2352_v5 = vpack.c.bf16 %v472_v3, %v471_v2  ;;  %v381_v6 = vld [vmem:[%s2635_s2 + $0x8] sm:$0xff] }
  0x46   : > { %s258_s25 = sld [smem:[#allocation3 + %s2320_s22]]  ;;  %s261_s27 = sadd.s32 1, %s2315_s26  ;;  %vm359_vm1 = vcmask 1040384   ;;  %v473_v7 = vld [vmem:[%s2636_s3 + $0x10] sm:$0xff]  ;;  %v1879_v8 = vpack.c.bf16 %v381_v6, %v380_v4  ;;  %v474_v11 = vld [vmem:[%s2636_s3 + $0x18] sm:$0xff]  ;;  %vm361_vm2 = vcmask 1041408  }
  0x47   : > { %s2324_s28 = sld [smem:[#allocation3 + %s261_s27]]  ;;  %s265_s0 = sadd.s32 1, %s2320_s22  ;;  %1885 = vmatpush3.bf16.msra.mxu1 %v2352_v5  ;;  %v2378_v14 = vpack.c.bf16 %v474_v11, %v473_v7  ;;  %vm363_vm3 = vcmask 1042432   ;;  %vm365_vm4 = vcmask 1043456   ;;  %vm367_vm5 = vcmask 1044480  }
  0x48   : > { %s2329_s29 = sld [smem:[#allocation3 + %s265_s0]]  ;;  %s269_s30 = sadd.s32 2, %s2315_s26  ;;  %1880 = vmatprep.subr.bf16.mxu0 %v1879_v8  ;;  %1886 = vmatprep.subr.bf16.mxu1 %v2169_v0  ;;  %vm369_vm6 = vcmask 1045504   ;;  %vm371_vm7 = vcmask 1046528   ;;  %vm389_vm8 = vcmask 130048   ;;  %vm475_vm9 = vcmask 261120  }
  0x49   : > { %s2332_s8 = sld [smem:[#allocation3 + %s269_s30]]  ;;  %s273_s9 = sadd.s32 2, %s2320_s22  ;;  %1882 = vmatpush3.bf16.msra.mxu0 %v1879_v8  ;;  %v1682_v57 = vld [vmem:[%s2637_s4] ss:$0 sm:$0xff] }
  0x4a   : > { %s2335_s10 = sld [smem:[#allocation3 + %s273_s9]]  ;;  %s277_s15 = sadd.s32 3, %s2315_s26  ;;  %1889 = vmatprep.subr.bf16.mxu0 %v2169_v0 }
  0x4b   : > { %s254_s13 = scalar_lea.vmem %s2634_s1, %s253_s24  ;;  %s2350_s9 = sld [smem:[#allocation3 + %s277_s15]]  ;;  %1888 = vmatpush3.bf16.msra.mxu1 %v2378_v14 }
  0x4c   : > { %s259_s27 = scalar_lea.vmem %s2634_s1, %s258_s25  ;;  %s281_s5 = sadd.s32 3, %s2320_s22  ;;  %v255_v9 = vld [vmem:[%s254_s13] sm:$0x1]  ;;  %1895 = vmatprep.subr.bf16.mxu1 %v2169_v0 }
  0x4d   : > { %v260_v10 = vld [vmem:[%s259_s27] sm:$0x1]  ;;  %s263_s16 = scalar_lea.vmem %s2634_s1, %s2324_s28  ;;  %s2368_s0 = sld [smem:[#allocation3 + %s281_s5]] }
  0x4e   : > { %v264_v12 = vld [vmem:[%s263_s16] sm:$0x1]  ;;  %s267_s18 = scalar_lea.vmem %s2634_s1, %s2329_s29  ;;  %v318_v13 = vrot.slane %v260_v10, 7  ;;  %s285_s13 = sadd.s32 4, %s2315_s26  ;;  %1789 = vmatmul.mubr.f32.vlgmr.msra.gmra.mrb[0].mxu1 %v2171_v1 }
  0x4f   : > { %v268_v15 = vld [vmem:[%s267_s18] sm:$0x1]  ;;  %s271_s27 = scalar_lea.vmem %s2634_s1, %s2332_s8  ;;  %v321_v16 = vrot.slane %v264_v12, 6  ;;  %s2386_s5 = sld [smem:[#allocation3 + %s285_s13]]  ;;  %1897 = vmatpush3.bf16.msra.mxu1 %v2352_v5  ;;  %1810 = vmatprep.mubr.msk.f32.mxu1 %vm2170_vm0, %v2171_v1 }
  0x50   : > { %v272_v17 = vld [vmem:[%s271_s27] sm:$0x1]  ;;  %s275_s24 = scalar_lea.vmem %s2634_s1, %s2335_s10  ;;  %v324_v18 = vrot.slane %v268_v15, 5  ;;  %v360_v19 = vsel %vm359_vm1, %v255_v9, %v318_v13  ;;  %s289_s15 = sadd.s32 4, %s2320_s22  ;;  %1898 = vmatprep.subr.bf16.mxu1 %v2169_v0 }
  0x51   : > { %v276_v20 = vld [vmem:[%s275_s24] sm:$0x1]  ;;  %s279_s30 = scalar_lea.vmem %s2634_s1, %s2350_s9  ;;  %v327_v21 = vrot.slane %v272_v17, 4  ;;  %v362_v22 = vsel %vm361_vm2, %v360_v19, %v321_v16  ;;  %s2399_s17 = sld [smem:[#allocation3 + %s289_s15]] }
  0x52   : > { %v280_v23 = vld [vmem:[%s279_s30] sm:$0x1]  ;;  %v330_v24 = vrot.slane %v276_v20, 3  ;;  %v364_v25 = vsel %vm363_vm3, %v362_v22, %v324_v18  ;;  %s293_s10 = sadd.s32 5, %s2315_s26  ;;  %s297_s21 = sadd.s32 5, %s2320_s22 }
  0x53   : > { %s283_s18 = scalar_lea.vmem %s2634_s1, %s2368_s0  ;;  %v333_v26 = vrot.slane %v280_v23, 2  ;;  %v366_v27 = vsel %vm365_vm4, %v364_v25, %v327_v21  ;;  %s2411_s13 = sld [smem:[#allocation3 + %s293_s10]]  ;;  %1900 = vmatpush3.bf16.msra.mxu1 %v2378_v14 }
  0x54   : > { %v284_v28 = vld [vmem:[%s283_s18] sm:$0x1]  ;;  %v368_v29 = vsel %vm367_vm5, %v366_v27, %v330_v24  ;;  %s298_s28 = sld [smem:[#allocation3 + %s297_s21]]  ;;  %s301_s23 = sadd.s32 6, %s2315_s26  ;;  %1907 = vmatprep.subr.bf16.mxu1 %v2169_v0 }
  0x55   : > { %v336_v30 = vrot.slane %v284_v28, 1  ;;  %v370_v31 = vsel %vm369_vm6, %v368_v29, %v333_v26  ;;  %s287_s29 = scalar_lea.vmem %s2634_s1, %s2386_s5  ;;  %s302_s19 = sld [smem:[#allocation3 + %s301_s23]] }
  0x56   : > { %s305_s24 = sadd.s32 6, %s2320_s22  ;;  %s309_s15 = sadd.s32 7, %s2315_s26  ;;  %v288_v33 = vld [vmem:[%s287_s29] sm:$0x1] }
  0x57   : > { %v372_v32 = vsel %vm371_vm7, %v370_v31, %v336_v30  ;;  %s291_s30 = scalar_lea.vmem %s2634_s1, %s2399_s17  ;;  %s306_s10 = sld [smem:[#allocation3 + %s305_s24]] }
  0x58   : > { %1777 = vmatprep.mubr.msk.f32.mxu0 %vm389_vm8, %v372_v32  ;;  %v292_v34 = vld [vmem:[%s291_s30] sm:$0x1]  ;;  %s310_s5 = sld [smem:[#allocation3 + %s309_s15]]  ;;  %s313_s21 = sadd.s32 7, %s2320_s22 }
  0x59   : > { %s295_s18 = scalar_lea.vmem %s2634_s1, %s2411_s13  ;;  %s314_s23 = sld [smem:[#allocation3 + %s313_s21]]  ;;  %v339_v35 = vrot.slane %v292_v34, 7 }
  0x5a   : > { %v296_v36 = vld [vmem:[%s295_s18] sm:$0x1]  ;;  %s299_s17 = scalar_lea.vmem %s2634_s1, %s298_s28  ;;  %s2172_s25 = smov 32  }
  0x5b   : > { %v300_v37 = vld [vmem:[%s299_s17] sm:$0x1]  ;;  %s303_s29 = scalar_lea.vmem %s2634_s1, %s302_s19  ;;  %v342_v38 = vrot.slane %v296_v36, 6  ;;  %v373_v39 = vsel %vm359_vm1, %v288_v33, %v339_v35  ;;  %s2173_s18 = smov 64  }
  0x5c   : > { %v304_v40 = vld [vmem:[%s303_s29] sm:$0x1]  ;;  %v345_v41 = vrot.slane %v300_v37, 5  ;;  %s247_s27 = sand.u32 1, %s2155_s12   ;;  %s2586_s13 = scalar_lea.hbm %s2640_s7, %s2315_s26 }
  0x5d   : > { %s307_s15 = scalar_lea.vmem %s2634_s1, %s306_s10  ;;  %v348_v42 = vrot.slane %v304_v40, 4  ;;  %v374_v43 = vsel %vm361_vm2, %v373_v39, %v342_v38  ;;  %s1678_s17 = sshll.u32 %s247_s27, 4 }
  0x5e   : > { %v308_v44 = vld [vmem:[%s307_s15] sm:$0x1]  ;;  %s311_s30 = scalar_lea.vmem %s2634_s1, %s310_s5  ;;  %v375_v45 = vsel %vm363_vm3, %v374_v43, %v345_v41  ;;  %s249_s24 = scalar_lea.vmem [#allocation7], %s1678_s17 }
  0x5f   : > { %v312_v46 = vld [vmem:[%s311_s30] sm:$0x1]  ;;  %s315_s9 = scalar_lea.vmem %s2634_s1, %s314_s23  ;;  %v351_v47 = vrot.slane %v308_v44, 3  ;;  %v376_v48 = vsel %vm365_vm4, %v375_v45, %v348_v42  ;;  %s1595_s8 = sshll.u32 %s249_s24, 4  ;;  %s2588_s8 = int_to_ptr.vmem [resolvable:$true] %s1595_s8 }
  0x60   : > { %v316_v49 = vld [vmem:[%s315_s9] sm:$0x1]  ;;  %v354_v50 = vrot.slane %v312_v46, 2  ;;  %s2592_s15 = scalar_lea.sflag [#allocation6], %s247_s27  ;;  %s2095_s28 = scalar_lea.vmem %s2588_s8, 256 }
  0x61   : > { %v357_v51 = vrot.slane %v316_v49, 1  ;;  %v377_v52 = vsel %vm367_vm5, %v376_v48, %v351_v47  ;;  %p2096_p8 = scmp.ne.s32.totalorder %s2588_s8, %s2095_s28  ;;  %p2661_p9 = scmp.ne.s32.totalorder %s2652_s20, 0 }
  0x62   : > { %v378_v53 = vsel %vm369_vm6, %v377_v52, %v354_v50  ;;  %s2176_s16 = smov [#allocation7]  }
  0x63   : > { %v379_v54 = vsel %vm371_vm7, %v378_v53, %v357_v51  ;;  %p2097_p12 = pnand %p2096_p8, %p2661_p9  ;;  %s2099_s26 = sshll.u32 %s2176_s16, 4  ;;  %s2100_s26 = int_to_ptr.vmem [resolvable:$false] %s2099_s26 }
  0x64   : > { %1778 = vmatmul.mubr.msk.f32.vlgmr.msra.gmra.mrb[0].mxu0 %vm389_vm8, %v379_v54  ;;  %s2101_s30 = scalar_lea.vmem %s2100_s26, 512  ;;  %p2102_p1 = scmp.lt.s32.totalorder %s2588_s8, %s2100_s26 }
  0x65   : > { %1891 = vmatpush3.bf16.msra.mxu0 %v2352_v5  ;;  %1799 = vmatprep.mubr.msk.f32.mxu0 %vm2170_vm0, %v2171_v1  ;;  %p2098_p13 = pneg %p2097_p12  ;;  %p2103_p5 = scmp.lt.s32.totalorder %s2101_s30, %s2095_s28 }
  0x66   : > { %1892 = vmatprep.subr.bf16.mxu0 %v2169_v0 }
  0x67   : > { %p2104_p6 = por %p2103_p5, %p2102_p1 }
  0x69   : > { %1894 = vmatpush3.bf16.msra.mxu0 %v2378_v14  ;;  %p2105_p7 = pnand %p2104_p6, %p2098_p13 }
  0x6a   : > { %1901 = vmatprep.subr.bf16.mxu0 %v2169_v0 }
 0x121   : > { %v545_v55 = vpop.f32.mrb[0].mxu1 }
 0x122   : > { %v1790_v56 = vpop.f32.mrb[1].mxu1 }
 0x137   : > { %v1779_v58 = vpop.f32.mrb[0].mxu0 }
 0x138   : > { %v2473_v59 = vadd.f32 %v1779_v58, %v1682_v57  ;;  %v462_v60 = vpop.f32.mrb[1].mxu0 }
 0x139   : > { %v2475_v61 = vadd.f32 %v1682_v57, %v462_v60 }
 0x13b   : > { %v549_v62 = vadd.f32 %v545_v55, %v2475_v61 }
 0x13d   : > { %v1685_v63 = vmul.f32 -1.442695, %v549_v62 }
 0x13f   : > { %2001 = vpow2.f32 %v1685_v63 }
 0x149   : > { %v2002_v2 = vpop.eup %2001 }
 0x14a   : > { %v553_v3 = vadd.f32 1.0, %v2002_v2 }
 0x14c   : > { %2003 = vrcp.f32 %v553_v3 }
 0x156   : > { %v2004_v4 = vpop.eup %2003 }
 0x157   : > { %v556_v6 = vmul.f32 2.0, %v2004_v4  ;;  %v558_v10 = vmul.f32 0.0, %v2004_v4 }
 0x159   : > { %v1686_v7 = vadd.f32 -1.0, %v556_v6 }
 0x15b   : > { %560 = vrot.lane.b32.xlu0 %v1686_v7, %s2172_s25 }
 0x1cd   : > { %v561_v8 = vpop.permute.xlu0 %560 }
 0x1ce   : > { %v563_v9 = vmul.f32 %v2004_v4, %v561_v8 }
 0x1d0   : > { %565 = vrot.lane.b32.xlu0 %v563_v9, %s2172_s25 }
 0x242   : > { %v566_v11 = vpop.permute.xlu0 %565 }
 0x243   : > { %v568_v12 = vadd.f32 %v566_v11, %v558_v10 }
 0x245   : > { %2005 = vtanh.f32 %v568_v12  ;;  %v663_v30 = vrot.slane %v568_v12, 6 }
 0x24f   : > { %v2006_v13 = vpop.eup %2005 }
 0x250   : > { %571 = vrot.lane.b32.xlu1 %v2006_v13, %s2172_s25 }
 0x2c2   : > { %v572_v15 = vpop.permute.xlu1 %571 }
 0x2c3   : > { %v2481_v16 = vmul.f32 %v2004_v4, %v572_v15 }
 0x2c5   : > { %576 = vrot.lane.b32.xlu1 %v2481_v16, %s2173_s18 }
 0x337   : > { %v577_v17 = vpop.permute.xlu1 %576 }
 0x338   : > { %1800 = vmatmul.mubr.msk.f32.vlgmr.msra.gmra.mrb[2].mxu0 %vm475_vm9, %v577_v17 }
 0x339   : > { %1903 = vmatpush3.bf16.msra.mxu0 %v2352_v5  ;;  %1821 = vmatprep.mubr.msk.f32.mxu0 %vm2170_vm0, %v2171_v1 }
 0x33a   : > { %1904 = vmatprep.subr.bf16.mxu0 %v2169_v0 }
 0x33d   : > { %1906 = vmatpush3.bf16.msra.mxu0 %v2378_v14 }
 0x33e   : > { %1913 = vmatprep.subr.bf16.mxu0 %v2169_v0 }
 0x40b   : > { %v646_v18 = vpop.f32.mrb[2].mxu0 }
 0x40c   : > { %v651_v19 = vrot.slane %v646_v18, 6  ;;  %v1801_v20 = vpop.f32.mrb[3].mxu0 }
 0x40e   : > { %v653_v21 = vadd.f32 %v651_v19, %v2475_v61 }
 0x410   : > { %v1688_v22 = vmul.f32 -1.442695, %v653_v21 }
 0x412   : > { %2007 = vpow2.f32 %v1688_v22 }
 0x41c   : > { %v2008_v23 = vpop.eup %2007 }
 0x41d   : > { %v657_v24 = vadd.f32 1.0, %v2008_v23 }
 0x41f   : > { %2009 = vrcp.f32 %v657_v24 }
 0x429   : > { %v2010_v25 = vpop.eup %2009 }
 0x42a   : > { %v660_v26 = vmul.f32 2.0, %v2010_v25  ;;  %v665_v31 = vmul.f32 %v2010_v25, %v663_v30 }
 0x42c   : > { %v1689_v27 = vadd.f32 -1.0, %v660_v26 }
 0x42e   : > { %667 = vrot.lane.b32.xlu0 %v1689_v27, %s2172_s25 }
 0x4a0   : > { %v668_v28 = vpop.permute.xlu0 %667 }
 0x4a1   : > { %v670_v29 = vmul.f32 %v2010_v25, %v668_v28 }
 0x4a3   : > { %672 = vrot.lane.b32.xlu1 %v670_v29, %s2172_s25 }
 0x515   : > { %v673_v32 = vpop.permute.xlu1 %672 }
 0x516   : > { %v675_v33 = vadd.f32 %v673_v32, %v665_v31 }
 0x518   : > { %2011 = vtanh.f32 %v675_v33  ;;  %v771_v51 = vrot.slane %v675_v33, 6 }
 0x522   : > { %v2012_v34 = vpop.eup %2011 }
 0x523   : > { %678 = vrot.lane.b32.xlu0 %v2012_v34, %s2172_s25 }
 0x595   : > { %v679_v35 = vpop.permute.xlu0 %678 }
 0x596   : > { %v681_v36 = vmul.f32 %v2010_v25, %v679_v35 }
 0x598   : > { %v683_v37 = vrot.slane %v681_v36, 2  ;;  %v1326_v58 = vsel %vm361_vm2, %v2481_v16, %v681_v36 }
 0x59a   : > { %684 = vrot.lane.b32.xlu1 %v683_v37, %s2173_s18 }
 0x60c   : > { %v685_v38 = vpop.permute.xlu1 %684 }
 0x60d   : > { %1811 = vmatmul.mubr.msk.f32.vlgmr.msra.gmra.mrb[2].mxu1 %vm475_vm9, %v685_v38 }
 0x60e   : > { %1909 = vmatpush3.bf16.msra.mxu1 %v2352_v5  ;;  %1832 = vmatprep.mubr.msk.f32.mxu1 %vm2170_vm0, %v2171_v1 }
 0x60f   : > { %1910 = vmatprep.subr.bf16.mxu1 %v2169_v0 }
 0x612   : > { %1912 = vmatpush3.bf16.msra.mxu1 %v2378_v14 }
 0x613   : > { %1919 = vmatprep.subr.bf16.mxu1 %v2169_v0 }
 0x6e0   : > { %v754_v39 = vpop.f32.mrb[2].mxu1 }
 0x6e1   : > { %v759_v40 = vrot.slane %v754_v39, 4  ;;  %v1812_v41 = vpop.f32.mrb[3].mxu1 }
 0x6e3   : > { %v761_v42 = vadd.f32 %v759_v40, %v2475_v61 }
 0x6e5   : > { %v1691_v43 = vmul.f32 -1.442695, %v761_v42 }
 0x6e7   : > { %2013 = vpow2.f32 %v1691_v43 }
 0x6f1   : > { %v2014_v44 = vpop.eup %2013 }
 0x6f2   : > { %v765_v45 = vadd.f32 1.0, %v2014_v44 }
 0x6f4   : > { %2015 = vrcp.f32 %v765_v45 }
 0x6fe   : > { %v2016_v46 = vpop.eup %2015 }
 0x6ff   : > { %v768_v47 = vmul.f32 2.0, %v2016_v46  ;;  %v773_v52 = vmul.f32 %v2016_v46, %v771_v51 }
 0x701   : > { %v1692_v48 = vadd.f32 -1.0, %v768_v47 }
 0x703   : > { %775 = vrot.lane.b32.xlu0 %v1692_v48, %s2172_s25 }
 0x775   : > { %v776_v49 = vpop.permute.xlu0 %775 }
 0x776   : > { %v778_v50 = vmul.f32 %v2016_v46, %v776_v49 }
 0x778   : > { %780 = vrot.lane.b32.xlu1 %v778_v50, %s2172_s25 }
 0x7ea   : > { %v781_v53 = vpop.permute.xlu1 %780 }
 0x7eb   : > { %v783_v54 = vadd.f32 %v781_v53, %v773_v52 }
 0x7ed   : > { %2017 = vtanh.f32 %v783_v54  ;;  %v879_v16 = vrot.slane %v783_v54, 6 }
 0x7f7   : > { %v2018_v55 = vpop.eup %2017 }
 0x7f8   : > { %786 = vrot.lane.b32.xlu0 %v2018_v55, %s2172_s25 }
 0x86a   : > { %v787_v56 = vpop.permute.xlu0 %786 }
 0x86b   : > { %v789_v57 = vmul.f32 %v2016_v46, %v787_v56 }
 0x86d   : > { %v791_v60 = vrot.slane %v789_v57, 4  ;;  %v1327_v62 = vsel %vm365_vm4, %v1326_v58, %v789_v57 }
 0x86f   : > { %792 = vrot.lane.b32.xlu1 %v791_v60, %s2173_s18 }
 0x8e1   : > { %v793_v63 = vpop.permute.xlu1 %792 }
 0x8e2   : > { %1822 = vmatmul.mubr.msk.f32.vlgmr.msra.gmra.mrb[4].mxu0 %vm475_vm9, %v793_v63 }
 0x8e3   : > { %1915 = vmatpush3.bf16.msra.mxu0 %v2352_v5  ;;  %1843 = vmatprep.mubr.msk.f32.mxu0 %vm2170_vm0, %v2171_v1 }
 0x8e4   : > { %1916 = vmatprep.subr.bf16.mxu0 %v2169_v0 }
 0x8e7   : > { %1918 = vmatpush3.bf16.msra.mxu0 %v2378_v14 }
 0x8e8   : > { %1925 = vmatprep.subr.bf16.mxu0 %v2169_v0 }
 0x9b5   : > { %v862_v2 = vpop.f32.mrb[4].mxu0 }
 0x9b6   : > { %v867_v3 = vrot.slane %v862_v2, 2  ;;  %v1823_v4 = vpop.f32.mrb[5].mxu0 }
 0x9b8   : > { %v869_v6 = vadd.f32 %v867_v3, %v2475_v61 }
 0x9ba   : > { %v1694_v7 = vmul.f32 -1.442695, %v869_v6 }
 0x9bc   : > { %2019 = vpow2.f32 %v1694_v7 }
 0x9c6   : > { %v2020_v8 = vpop.eup %2019 }
 0x9c7   : > { %v873_v9 = vadd.f32 1.0, %v2020_v8 }
 0x9c9   : > { %2021 = vrcp.f32 %v873_v9 }
 0x9d3   : > { %v2022_v10 = vpop.eup %2021 }
 0x9d4   : > { %v876_v11 = vmul.f32 2.0, %v2022_v10  ;;  %v881_v17 = vmul.f32 %v2022_v10, %v879_v16 }
 0x9d6   : > { %v1695_v12 = vadd.f32 -1.0, %v876_v11 }
 0x9d8   : > { %883 = vrot.lane.b32.xlu0 %v1695_v12, %s2172_s25 }
 0xa4a   : > { %v884_v13 = vpop.permute.xlu0 %883 }
 0xa4b   : > { %v886_v15 = vmul.f32 %v2022_v10, %v884_v13 }
 0xa4d   : > { %888 = vrot.lane.b32.xlu1 %v886_v15, %s2172_s25 }
 0xabf   : > { %v889_v18 = vpop.permute.xlu1 %888 }
 0xac0   : > { %v891_v19 = vadd.f32 %v889_v18, %v881_v17 }
 0xac2   : > { %2023 = vtanh.f32 %v891_v19  ;;  %v984_v36 = vrot.slane %v891_v19, 6 }
 0xacc   : > { %v2024_v61 = vpop.eup %2023 }
 0xacd   : > { %894 = vrot.lane.b32.xlu0 %v2024_v61, %s2172_s25 }
 0xb3f   : > { %v895_v20 = vpop.permute.xlu0 %894 }
 0xb40   : > { %v897_v21 = vmul.f32 %v2022_v10, %v895_v20 }
 0xb42   : > { %v899_v22 = vrot.slane %v897_v21, 6  ;;  %v2524_v23 = vsel %vm369_vm6, %v1327_v62, %v897_v21 }
 0xb44   : > { %900 = vrot.lane.b32.xlu1 %v899_v22, %s2173_s18 }
 0xbb6   : > { %v901_v24 = vpop.permute.xlu1 %900 }
 0xbb7   : > { %1833 = vmatmul.mubr.msk.f32.vlgmr.msra.gmra.mrb[4].mxu1 %vm475_vm9, %v901_v24 }
 0xbb8   : > { %1921 = vmatpush3.bf16.msra.mxu1 %v2352_v5  ;;  %1854 = vmatprep.mubr.msk.f32.mxu1 %vm2170_vm0, %v2171_v1 }
 0xbb9   : > { %1922 = vmatprep.subr.bf16.mxu1 %v2169_v0 }
 0xbbc   : > { %1924 = vmatpush3.bf16.msra.mxu1 %v2378_v14 }
 0xc8a   : > { %v970_v25 = vpop.f32.mrb[4].mxu1 }
 0xc8b   : > { %v974_v26 = vadd.f32 %v970_v25, %v2473_v59  ;;  %v1834_v27 = vpop.f32.mrb[5].mxu1 }
 0xc8d   : > { %v1697_v28 = vmul.f32 -1.442695, %v974_v26 }
 0xc8f   : > { %2025 = vpow2.f32 %v1697_v28 }
 0xc99   : > { %v2026_v29 = vpop.eup %2025 }
 0xc9a   : > { %v978_v30 = vadd.f32 1.0, %v2026_v29 }
 0xc9c   : > { %2027 = vrcp.f32 %v978_v30 }
 0xca6   : > { %v2028_v31 = vpop.eup %2027 }
 0xca7   : > { %v981_v32 = vmul.f32 2.0, %v2028_v31  ;;  %v986_v37 = vmul.f32 %v2028_v31, %v984_v36 }
 0xca9   : > { %v1698_v33 = vadd.f32 -1.0, %v981_v32 }
 0xcab   : > { %988 = vrot.lane.b32.xlu0 %v1698_v33, %s2172_s25 }
 0xd1d   : > { %v989_v34 = vpop.permute.xlu0 %988 }
 0xd1e   : > { %v991_v35 = vmul.f32 %v2028_v31, %v989_v34 }
 0xd20   : > { %993 = vrot.lane.b32.xlu1 %v991_v35, %s2172_s25 }
 0xd92   : > { %v994_v38 = vpop.permute.xlu1 %993 }
 0xd93   : > { %v996_v39 = vadd.f32 %v994_v38, %v986_v37 }
 0xd95   : > { %2029 = vtanh.f32 %v996_v39 }
 0xd9f   : > { %v2030_v40 = vpop.eup %2029 }
 0xda0   : > { %999 = vrot.lane.b32.xlu0 %v2030_v40, %s2172_s25 }
 0xe12   : > { %v1000_v41 = vpop.permute.xlu0 %999 }
 0xe13   : > { %v2537_v42 = vmul.f32 %v2028_v31, %v1000_v41 }
 0xe15   : > { %1004 = vrot.lane.b32.xlu1 %v2537_v42, %s2173_s18 }
 0xe87   : > { %v1005_v43 = vpop.permute.xlu1 %1004 }
 0xe88   : > { %1844 = vmatmul.mubr.msk.f32.vlgmr.msra.gmra.mrb[6].mxu0 %vm475_vm9, %v1005_v43  ;;  %v1333_v43 = vld [vmem:[#allocation4 + $0x8] sm:$0xff] }
 0xe89   : > { %1927 = vmatpush3.bf16.msra.mxu0 %v2352_v5  ;;  %1865 = vmatprep.mubr.msk.f32.mxu0 %vm2170_vm0, %v2171_v1 }
 0xe8a   : > { %1928 = vmatprep.subr.bf16.mxu0 %v2169_v0  ;;  %v1091_v0 = vrot.slane %v996_v39, 6 }
 0xe8d   : > { %1930 = vmatpush3.bf16.msra.mxu0 %v2378_v14 }
 0xf5b   : > { %v1074_v44 = vpop.f32.mrb[6].mxu0 }
 0xf5c   : > { %v1079_v45 = vrot.slane %v1074_v44, 6  ;;  %v1845_v46 = vpop.f32.mrb[7].mxu0  ;;  %v1334_v44 = vld [vmem:[#allocation4 + $0x10] sm:$0xff] }
 0xf5d   : > { %v1335_v46 = vld [vmem:[#allocation4 + $0x18] sm:$0xff] }
 0xf5e   : > { %v1081_v47 = vadd.f32 %v1079_v45, %v2473_v59 }
 0xf60   : > { %v1700_v48 = vmul.f32 -1.442695, %v1081_v47  ;;  %v1935_v47 = vpack.c.bf16 %v1335_v46, %v1334_v44 }
 0xf62   : > { %2031 = vpow2.f32 %v1700_v48 }
 0xf6c   : > { %v2032_v49 = vpop.eup %2031 }
 0xf6d   : > { %v1085_v50 = vadd.f32 1.0, %v2032_v49 }
 0xf6f   : > { %2033 = vrcp.f32 %v1085_v50 }
 0xf79   : > { %v2034_v51 = vpop.eup %2033 }
 0xf7a   : > { %v1088_v52 = vmul.f32 2.0, %v2034_v51  ;;  %v1093_v14 = vmul.f32 %v2034_v51, %v1091_v0 }
 0xf7c   : > { %v1701_v5 = vadd.f32 -1.0, %v1088_v52  ;;  %v1428_v52 = vlaneseq }
 0xf7e   : > { %1095 = vrot.lane.b32.xlu0 %v1701_v5, %s2172_s25  ;;  %v1429_v5 = vand.u32 127, %v1428_v52 }
 0xf80   : > { %vm1430_vm10 = vcmp.lt.s32.totalorder %v1429_v5, 5 }
 0xff0   : > { %v1096_v1 = vpop.permute.xlu0 %1095 }
 0xff1   : > { %v1098_v53 = vmul.f32 %v2034_v51, %v1096_v1  ;;  %v1708_v1 = vld [vmem:[%s2639_s6] ss:$0 sm:$0xff] }
 0xff3   : > { %1100 = vrot.lane.b32.xlu1 %v1098_v53, %s2172_s25 }
0x1065   : > { %v1101_v54 = vpop.permute.xlu1 %1100 }
0x1066   : > { %v1103_v55 = vadd.f32 %v1101_v54, %v1093_v14 }
0x1068   : > { %2035 = vtanh.f32 %v1103_v55  ;;  %v1199_v15 = vrot.slane %v1103_v55, 6 }
0x1072   : > { %v2036_v56 = vpop.eup %2035 }
0x1073   : > { %1106 = vrot.lane.b32.xlu0 %v2036_v56, %s2172_s25 }
0x10e5   : > { %v1107_v57 = vpop.permute.xlu0 %1106 }
0x10e6   : > { %v1109_v58 = vmul.f32 %v2034_v51, %v1107_v57 }
0x10e8   : > { %v1111_v60 = vrot.slane %v1109_v58, 2  ;;  %v1329_v21 = vsel %vm361_vm2, %v2537_v42, %v1109_v58  ;;  %v1332_v42 = vld [vmem:[#allocation4] sm:$0xff] }
0x10e9   : > { %v1931_v45 = vpack.c.bf16 %v1333_v43, %v1332_v42 }
0x10ea   : > { %1112 = vrot.lane.b32.xlu1 %v1111_v60, %s2173_s18 }
0x10eb   : > { %1932 = vmatprep.subr.bf16.mxu1 %v1931_v45 }
0x115c   : > { %v1113_v62 = vpop.permute.xlu1 %1112 }
0x115d   : > { %1855 = vmatmul.mubr.msk.f32.vlgmr.msra.gmra.mrb[6].mxu1 %vm475_vm9, %v1113_v62 }
0x115e   : > { %1934 = vmatpush3.bf16.msra.mxu1 %v1931_v45 }
0x115f   : > { %1936 = vmatprep.subr.bf16.mxu1 %v1935_v47 }
0x1162   : > { %1938 = vmatpush3.bf16.msra.mxu1 %v1935_v47 }
0x1230   : > { %v1182_v63 = vpop.f32.mrb[6].mxu1 }
0x1231   : > { %v1187_v2 = vrot.slane %v1182_v63, 4  ;;  %v1856_v3 = vpop.f32.mrb[7].mxu1 }
0x1233   : > { %v1189_v4 = vadd.f32 %v1187_v2, %v2473_v59 }
0x1235   : > { %v1703_v6 = vmul.f32 -1.442695, %v1189_v4 }
0x1237   : > { %2037 = vpow2.f32 %v1703_v6 }
0x1241   : > { %v2038_v7 = vpop.eup %2037 }
0x1242   : > { %v1193_v8 = vadd.f32 1.0, %v2038_v7 }
0x1244   : > { %2039 = vrcp.f32 %v1193_v8 }
0x124e   : > { %v2040_v9 = vpop.eup %2039 }
0x124f   : > { %v1196_v10 = vmul.f32 2.0, %v2040_v9  ;;  %v1201_v16 = vmul.f32 %v2040_v9, %v1199_v15 }
0x1251   : > { %v1704_v11 = vadd.f32 -1.0, %v1196_v10  ;;  %v2174_v10 = vmov 1983009808  }
0x1253   : > { %1203 = vrot.lane.b32.xlu0 %v1704_v11, %s2172_s25  ;;  %v1459_v11 = vunpack.c.l.s4 %v2174_v10 }
0x12c5   : > { %v1204_v12 = vpop.permute.xlu0 %1203 }
0x12c6   : > { %v1206_v13 = vmul.f32 %v2040_v9, %v1204_v12  ;;  %v1460_v12 = vunpack.c.0.s8 %v1459_v11 }
0x12c8   : > { %1208 = vrot.lane.b32.xlu1 %v1206_v13, %s2172_s25  ;;  %v1462_v13 = vshrl.u32 %v1428_v52, 7 }
0x133a   : > { %v1209_v17 = vpop.permute.xlu1 %1208 }
0x133b   : > { %v1211_v18 = vadd.f32 %v1209_v17, %v1201_v16  ;;  %v1463_v17 = vsub.s32 %v1460_v12, %v1462_v13 }
0x133d   : > { %2041 = vtanh.f32 %v1211_v18  ;;  %v1307_v38 = vrot.slane %v1211_v18, 6  ;;  %v2175_v18 = vmov 1934713408  }
0x1347   : > { %v2042_v19 = vpop.eup %2041 }
0x1348   : > { %1214 = vrot.lane.b32.xlu0 %v2042_v19, %s2172_s25  ;;  %v1501_v19 = vunpack.c.l.s4 %v2175_v18 }
0x13ba   : > { %v1215_v61 = vpop.permute.xlu0 %1214 }
0x13bb   : > { %v1217_v20 = vmul.f32 %v2040_v9, %v1215_v61 }
0x13bd   : > { %v1219_v22 = vrot.slane %v1217_v20, 4  ;;  %v1330_v24 = vsel %vm365_vm4, %v1329_v21, %v1217_v20 }
0x13bf   : > { %1220 = vrot.lane.b32.xlu1 %v1219_v22, %s2173_s18 }
0x1431   : > { %v1221_v25 = vpop.permute.xlu1 %1220 }
0x1432   : > { %1866 = vmatmul.mubr.msk.f32.vlgmr.msra.gmra.mrb[8].mxu0 %vm475_vm9, %v1221_v25 }
0x1505   : > { %v1290_v26 = vpop.f32.mrb[8].mxu0 }
0x1506   : > { %v1295_v27 = vrot.slane %v1290_v26, 2  ;;  %v1867_v28 = vpop.f32.mrb[9].mxu0 }
0x1508   : > { %v1297_v29 = vadd.f32 %v1295_v27, %v2473_v59 }
0x150a   : > { %v1706_v30 = vmul.f32 -1.442695, %v1297_v29 }
0x150c   : > { %2043 = vpow2.f32 %v1706_v30 }
0x1516   : > { %v2044_v31 = vpop.eup %2043 }
0x1517   : > { %v1301_v32 = vadd.f32 1.0, %v2044_v31 }
0x1519   : > { %2045 = vrcp.f32 %v1301_v32 }
0x1523   : > { %v2046_v33 = vpop.eup %2045 }
0x1524   : > { %v1304_v34 = vmul.f32 2.0, %v2046_v33  ;;  %v1309_v39 = vmul.f32 %v2046_v33, %v1307_v38 }
0x1526   : > { %v1707_v35 = vadd.f32 -1.0, %v1304_v34 }
0x1528   : > { %1311 = vrot.lane.b32.xlu0 %v1707_v35, %s2172_s25 }
0x159a   : > { %v1312_v36 = vpop.permute.xlu0 %1311 }
0x159b   : > { %v1314_v37 = vmul.f32 %v2046_v33, %v1312_v36 }
0x159d   : > { %1316 = vrot.lane.b32.xlu1 %v1314_v37, %s2172_s25 }
0x15a1   : > { %1345 = vrot.lane.b32.xlu1 %v2524_v23, %s2173_s18 }
0x160f   : > { %v1317_v59 = vpop.permute.xlu1 %1316 }
0x1610   : > { %v1319_v40 = vadd.f32 %v1317_v59, %v1309_v39 }
0x1612   : > { %2047 = vtanh.f32 %v1319_v40 }
0x1613   : > { %v1346_v41 = vpop.permute.xlu1 %1345 }
0x1614   : > { %1876 = vmatprep.mubr.msk.f32.mxu1 %vm475_vm9, %v1346_v41 }
0x161c   : > { %v2048_v48 = vpop.eup %2047 }
0x161d   : > { %1322 = vrot.lane.b32.xlu0 %v2048_v48, %s2172_s25 }
0x168f   : > { %v1323_v23 = vpop.permute.xlu0 %1322 }
0x1690   : > { %v1325_v49 = vmul.f32 %v2046_v33, %v1323_v23 }
0x1692   : > { %v1331_v50 = vsel %vm369_vm6, %v1330_v24, %v1325_v49  ;;  %v1502_v24 = vunpack.c.0.s8 %v1501_v19 }
0x1693   : > { %1347 = vrot.lane.b32.xlu0 %v1331_v50, %s2173_s18 }
0x1694   : > { %v1505_v33 = vsub.s32 %v1502_v24, %v1462_v13 }
0x1705   : > { %v1348_v51 = vpop.permute.xlu0 %1347 }
0x1706   : > { %1877 = vmatmul.mubr.msk.f32.vlgmr.msra.gmra.mrb[8].mxu1 %vm475_vm9, %v1348_v51 }
0x17d9   : > { %v1878_v53 = vpop.f32.mrb[8].mxu1 }
0x17da   : > { %v1425_v0 = vadd.f32 %v1878_v53, %v1708_v1  ;;  %v1419_v14 = vpop.f32.mrb[9].mxu1 }
0x17db   : > { %v1420_v54 = vadd.f32 %v1708_v1, %v1419_v14 }
0x17dc   : > { %v1432_v55 = vsel %vm1430_vm10, %v1425_v0, -1e+30 }
0x17dd   : > { %1435 = vmax.xlane.f32.xlu0 %v1432_v55  ;;  %v1431_v56 = vsel %vm1430_vm10, %v1420_v54, -1e+30 }
0x17de   : > { %1433 = vmax.xlane.f32.xlu1 %v1431_v56 }
0x186a   : > { %v1436_v57 = vpop.xlane.xlu0 %1435 }
0x186b   : > { %v1438_v58 = vsub.f32 %v1425_v0, %v1436_v57  ;;  %v1434_v60 = vpop.xlane.xlu1 %1433 }
0x186c   : > { %v1437_v62 = vsub.f32 %v1420_v54, %v1434_v60 }
0x186d   : > { %v1441_v63 = vmul.f32 1.442695, %v1438_v58 }
0x186e   : > { %v1439_v2 = vmul.f32 1.442695, %v1437_v62 }
0x186f   : > { %2049 = vpow2.f32 %v1441_v63 }
0x1870   : > { %2051 = vpow2.f32 %v1439_v2 }
0x1879   : > { %v2050_v3 = vpop.eup %2049 }
0x187a   : > { %v2052_v4 = vpop.eup %2051  ;;  %v1444_v6 = vsel %vm1430_vm10, %v2050_v3, 0.0 }
0x187b   : > { %1447 = vadd.xlane.f32.xlu1 %v1444_v6  ;;  %v1443_v7 = vsel %vm1430_vm10, %v2052_v4, 0.0 }
0x187c   : > { %1445 = vadd.xlane.f32.xlu0 %v1443_v7 }
0x1908   : > { %v1448_v8 = vpop.xlane.xlu1 %1447 }
0x1909   : > { %2053 = vlog2.f32 %v1448_v8  ;;  %v1446_v9 = vpop.xlane.xlu0 %1445 }
0x190a   : > { %2055 = vlog2.f32 %v1446_v9 }
0x1913   : > { %v2054_v15 = vpop.eup %2053 }
0x1914   : > { %v2056_v16 = vpop.eup %2055  ;;  %v1452_v61 = vmul.f32 0.6931472, %v2054_v15 }
0x1915   : > { %v1450_v20 = vmul.f32 0.6931472, %v2056_v16 }
0x1916   : > { %v1454_v21 = vsub.f32 %v1438_v58, %v1452_v61 }
0x1917   : > { %v1453_v22 = vsub.f32 %v1437_v62, %v1450_v20 }
0x1918   : > { %v1474_v25 = vcombine.high %v1454_v21, %v1454_v21  ;;  %v1481_v26 = vrot.slane %v1454_v21, %v1463_v17 }
0x1919   : > { %v1457_v27 = vcombine.high %v1453_v22, %v1453_v22  ;;  %v1464_v28 = vrot.slane %v1453_v22, %v1463_v17 }
0x191a   : > { %v1488_v29 = vrot.slane %v1474_v25, %v1463_v17  ;;  %v1489_v30 = vcombine.high %v1481_v26, %v1481_v26 }
0x191b   : > { %v1471_v31 = vrot.slane %v1457_v27, %v1463_v17  ;;  %v1472_v32 = vcombine.high %v1464_v28, %v1464_v28 }
0x191c   : > { %v1490_v34 = vcombine.high %v1488_v29, %v1488_v29  ;;  %v1517_v35 = vcombine.low %v1481_v26, %v1489_v30 }
0x191d   : > { %v1473_v36 = vcombine.high %v1471_v31, %v1471_v31  ;;  %v1499_v37 = vcombine.low %v1464_v28, %v1472_v32 }
0x191e   : > { %v1526_v38 = vcombine.low %v1488_v29, %v1490_v34  ;;  %v1524_v59 = vrot.slane %v1517_v35, %v1505_v33 }
0x191f   : > { %v1508_v39 = vcombine.low %v1471_v31, %v1473_v36  ;;  %v1506_v41 = vrot.slane %v1499_v37, %v1505_v33 }
0x1920   : > { %v1533_v40 = vrot.slane %v1526_v38, %v1505_v33 }
0x1921   : > { %v1515_v42 = vrot.slane %v1508_v39, %v1505_v33 }
0x1922   : > { %v1544_v43 = vcombine.low %v1524_v59, %v1533_v40  ;;  %v1712_v44 = vcombine.high %v1524_v59, %v1533_v40 }
0x1923   : > { %v1543_v45 = vcombine.low %v1506_v41, %v1515_v42  ;;  %v1711_v46 = vcombine.high %v1506_v41, %v1515_v42 }
0x1924   : > { %v1558_v47 = vrot.slane %v1544_v43, %v1463_v17  ;;  %v1575_v48 = vrot.slane %v1712_v44, %v1463_v17 }
0x1925   : > { %v1551_v23 = vrot.slane %v1543_v45, %v1463_v17  ;;  %v1568_v49 = vrot.slane %v1711_v46, %v1463_v17 }
0x1927   : > { %v1559_v50 = vcombine.low %v1551_v23, %v1558_v47  ;;  %v1576_v51 = vcombine.low %v1568_v49, %v1575_v48 }
0x1929   : > { %1579 = vst [vmem:[%s249_s24] sm:$0xff] %v1559_v50  ;;  %1580 = vst [vmem:[%s249_s24 + $0x8] sm:$0xff] %v1576_v51 }
0x192a   : > { %2108 = shalt.err (!%p2105_p7)
}
0x192b   : > { %s2109_s19 = scalar_lea.hbm %s2586_s13, 256  ;;  %s2113_s10 = scalar_lea.hbm %s2640_s7, 512 }
0x192c   : > { %p2110_p10 = scmp.ne.s32.totalorder %s2586_s13, %s2109_s19  ;;  %p2114_p2 = scmp.lt.u32.totalorder %s2586_s13, %s2640_s7 }
0x192d   : > { %p2115_p4 = scmp.lt.u32.totalorder %s2113_s10, %s2109_s19  ;;  %p2117_p8 = scmp.lt.u32.totalorder %s2109_s19, %s2586_s13 }
0x192e   : > { %p2111_p11 = pnand %p2110_p10, %p2661_p9 }
0x192f   : > { %p2116_p3 = por %p2115_p4, %p2114_p2 }
0x1930   : > { %p2112_p0 = pneg %p2111_p11 }
0x1931   : > { %p2118_p12 = por %p2117_p8, %p2116_p3 }
0x1933   : > { %p2119_p13 = pnand %p2118_p12, %p2112_p0 }
0x1935   : > { %2122 = shalt.err (!%p2119_p13)
}
0x1936   : > { %s2177_s18 = smov 128   ;;  %s2178_s23 = smov 8  }
0x1937   : > { %1943 = dma.vmem_to_hbm [thread:$0]  (%p2661_p9), %s2588_s8, 256, %s2586_s13, %s2592_s15, %s2177_s18, %s2177_s18, %s2178_s23  }
0x1938 PF: > { %s2662_s0 = sld [smem:[#allocation14_spill]]  ;;  %p1955_p1 = scmp.ge.s32.totalorder %s2163_s14, 2 }
0x1939   : > { %s1610_s27 = sand.u32 1, %s2151_s11  }
0x193a   : > { %s1611_s17 = scalar_lea.sflag [#allocation6], %s1610_s27 }
0x193e   : > { %p2663_p5 = scmp.ne.s32.totalorder %s2662_s0, 0 }
0x1940   : > { %p1950_p6 = pnand %p1955_p1, %p2663_p5 }
0x1942   : > { %2146 = dma.done.wait (!%p1950_p6), %s1611_s17, 256  }
0x1943   : > { %2148 = vsyncadd (!%p1950_p6), %s1611_s17, 4294967040  ;;  %s2664_s14 = sld [smem:[#allocation12_spill]]  ;;  %s2665_s24 = sld [smem:[#allocation11_spill]] }
0x1944   : > { %s2666_s13 = sld [smem:[#allocation13_spill]]  ;;  %s2667_s11 = smov %s2155_s12 }
0x1949   : > { %p22_p7 = scmp.ge.s32.totalorder %s2664_s14, 4   ;;  %s2668_s12 = smov %s2665_s24 }
0x194b   :  { %24 = sbr.rel (!%p22_p7) target bundleno = 16 (0x10), region = 97 }
0x1952   :  { %1616 = vsyncpa [#allocation5], 1 }
0x1953   :  { %1618 = vsyncpa [#allocation5 + $0x1], 1 }
0x1954   :  { %1619 = vsyncpa [#allocation6], 1 }
0x1955   :  { %1621 = vsyncpa [#allocation6 + $0x1], 1 }

</bundles_post_ra>
